<compile_context>
chip_gen: v7x
topology: tpu7x:2x2x1
jax: 0.10.0
libtpu: 0.0.40
codegen_flags: <defaults>
</compile_context>

<pallas_src>
import math

import jax
import jax.numpy as jnp
from jax import lax
from jax.experimental import pallas as pl
from jax.experimental.pallas import tpu as pltpu

# ----------------------------- KAN configuration -----------------------------
GRID = 5                          # number of grid intervals
ORDER = 3                         # spline order (cubic)
NBASIS = GRID + ORDER             # 8 basis functions per input feature
NFEAT = NBASIS + 1                # +1 for the silu/base path
GRID_MIN, GRID_MAX = -1.0, 1.0

ROW_GROUP = 8                     # sublane-aligned row group for feature build
LANE_CHUNK = 128                  # lane-aligned batch chunk per inner loop step

_H = (GRID_MAX - GRID_MIN) / GRID
# Total Cox-de Boor normalization for a uniform grid: prod_{d=1..ORDER} 1/(d*h).
# Folded into the fused spline weights so the in-kernel recursion has no '* inv'.
SPLINE_NORM = 1.0 / (math.factorial(ORDER) * _H ** ORDER)


def _knots():
    """Extended uniform knot vector (python floats -> compile-time constants)."""
    return [GRID_MIN + (m - ORDER) * _H for m in range(GRID + 2 * ORDER + 1)]


# ------------------------- kernel-side building blocks ------------------------
def _silu_kernel(x):
    # exp and the reciprocal both lower to the (otherwise idle) EUP slot.
    return x * pl.reciprocal(1.0 + jnp.exp(-x), approx=False)


def _bspline_bases_raw(x):
    """UNNORMALIZED cubic B-spline bases on the uniform grid (elementwise on x).

    Returns NBASIS arrays equal to B_m(x) * (3! * h^3); the constant factor is
    pre-folded into the fused weights (SPLINE_NORM).  Order-0 bases are built
    as differences of float step functions; the per-level 1/(d*h) divisions of
    the Cox-de Boor recursion are dropped (uniform grid => constants).
    """
    t = _knots()
    nk = len(t)
    dt = x.dtype

    # order-0: indicator of [t[m], t[m+1]) as a step-function difference.
    ge_prev = (x >= t[0]).astype(dt)
    bases = []
    for m in range(1, nk):
        ge_m = (x >= t[m]).astype(dt)
        bases.append(ge_prev - ge_m)
        ge_prev = ge_m

    # Unnormalized Cox-de Boor recursion (working set is one (8,128) block).
    xmt = [x - t[m] for m in range(nk)]
    for d in range(1, ORDER + 1):
        bases = [xmt[m] * bases[m] - xmt[m + d + 1] * bases[m + 1]
                 for m in range(len(bases) - 1)]
    assert len(bases) == NBASIS
    return bases


def _kan_layer_chunk(x, w_ref):
    """One fused KAN layer on a (Din, LANE_CHUNK) chunk.

    x      : (Din, LC) f32 with Din a multiple of ROW_GROUP
    w_ref  : (Dout, Din//ROW_GROUP, NFEAT*ROW_GROUP) fused weights (VMEM resident)
    returns: (Dout, LC) f32

    Features are built per 8-row group (bounded vreg working set); each group
    feeds one small MXU matmul that is accumulated into the layer output, so
    no feature slab / VMEM staging is needed.
    """
    din = x.shape[0]
    acc = None
    for g in range(din // ROW_GROUP):
        xg = x[g * ROW_GROUP:(g + 1) * ROW_GROUP, :]                  # (8, LC)
        feats = [_silu_kernel(xg)] + _bspline_bases_raw(xg)           # NFEAT x (8, LC)
        f_g = jnp.concatenate(feats, axis=0)                          # (NFEAT*8, LC)
        part = jnp.dot(w_ref[:, g, :], f_g,
                       preferred_element_type=jnp.float32)            # (Dout, LC)
        acc = part if acc is None else acc + part
    return acc


# --------------------------------- kernel ------------------------------------
def _kan_ode_kernel(z_ref, w1_ref, w2_ref, out_ref):
    """One batch tile of the full two-layer KAN forward.

    z_ref  : (Dl, TB)  latent state, batch on the lane axis
    w1_ref : (Dh, Dl//8, NFEAT*8)  fused layer-1 weights
    w2_ref : (Dl, Dh//8, NFEAT*8)  fused layer-2 weights
    out_ref: (Dl, TB)  dz/dt
    """
    tb = z_ref.shape[1]
    n_chunks = tb // LANE_CHUNK

    def do_chunk(off):
        x = z_ref[:, pl.ds(off, LANE_CHUNK)]                          # (Dl, LC)
        h = _kan_layer_chunk(x, w1_ref)                               # (Dh, LC)
        y = _kan_layer_chunk(h, w2_ref)                               # (Dl, LC)
        out_ref[:, pl.ds(off, LANE_CHUNK)] = y.astype(out_ref.dtype)

    if n_chunks == 1:
        do_chunk(0)
    else:
        # Rolled loop bounds the per-chunk live ranges (vreg pressure control);
        # the body is large enough that loop overhead is negligible.
        def body(c, carry):
            do_chunk(pl.multiple_of(c * LANE_CHUNK, LANE_CHUNK))
            return carry
        lax.fori_loop(0, n_chunks, body, None)


# -------------------------------- wrappers ------------------------------------
def _choose_tiling(batch):
    """Pad batch to a lane-aligned size and pick a batch tile.

    Tiles are >= 128 (unmasked lane-dense stores) and we keep >= 2 tiles
    whenever the padded batch allows, so the "parallel" grid axis can occupy
    both TensorCores on v7x.  VMEM is never the limiter here (no slabs), the
    tile cap only bounds the inner chunk-loop trip count.
    """
    b_pad = -(-batch // LANE_CHUNK) * LANE_CHUNK
    tb = LANE_CHUNK
    for cand in (4096, 2048, 1024, 512, 256, 128):
        if b_pad >= 2 * cand:
            tb = cand
            break
    b_pad = -(-b_pad // tb) * tb
    return tb, b_pad


def kan_ode_forward_cf(z_cf, fused_params):
    """dz/dt for channels-first state z_cf: (latent_dim, batch).

    No wrapper transposes: ODE solvers should carry the state in this layout
    and call this function directly for every RHS evaluation.
    """
    w1, w2 = fused_params
    dl, batch = z_cf.shape
    tb, b_pad = _choose_tiling(batch)

    z_cf = z_cf.astype(jnp.float32)
    if b_pad != batch:
        z_cf = jnp.pad(z_cf, ((0, 0), (0, b_pad - batch)))

    out = pl.pallas_call(
        _kan_ode_kernel,
        out_shape=jax.ShapeDtypeStruct((dl, b_pad), jnp.float32),
        grid_spec=pltpu.PrefetchScalarGridSpec(
            num_scalar_prefetch=0,
            grid=(b_pad // tb,),
            in_specs=[
                pl.BlockSpec((dl, tb), lambda i: (0, i)),        # latent tile
                pl.BlockSpec(w1.shape, lambda i: (0, 0, 0)),     # resident weights
                pl.BlockSpec(w2.shape, lambda i: (0, 0, 0)),     # resident weights
            ],
            out_specs=pl.BlockSpec((dl, tb), lambda i: (0, i)),
        ),
        compiler_params=pltpu.CompilerParams(
            dimension_semantics=("parallel",),   # shards batch tiles across v7x's 2 TCs
        ),
    )(z_cf, w1, w2)

    return out[:, :batch]


def ode_function_forward(t, z, fused_params):
    """Equivalent of ODEFunction.forward(t, z).  `t` is ignored (as in PyTorch).

    z: (batch, latent_dim).  The transposes below are interface plumbing only;
    solvers that carry the state channels-first should use kan_ode_forward_cf.
    """
    del t
    out_cf = kan_ode_forward_cf(jnp.transpose(z), fused_params)
    return jnp.transpose(out_cf).astype(z.dtype)


# ------------------------------ parameters ------------------------------------
def init_kan_params(key, latent_dim, hidden_dim):
    """Deterministic synthetic init for the two KAN layers (raw, unfused form).

    Per layer (Din -> Dout):
      coef       : (Din, Dout, NBASIS)
      scale_sp   : (Din, Dout)
      scale_base : (Din, Dout)
    """
    def one_layer(k, din, dout):
        k1, k2, k3 = jax.random.split(k, 3)
        coef = 0.1 * jax.random.normal(k1, (din, dout, NBASIS), jnp.float32)
        scale_sp = 1.0 + 0.05 * jax.random.normal(k2, (din, dout), jnp.float32)
        scale_base = jax.random.normal(k3, (din, dout), jnp.float32) / jnp.sqrt(din)
        return coef, scale_sp, scale_base

    ka, kb = jax.random.split(key)
    return one_layer(ka, latent_dim, hidden_dim), one_layer(kb, hidden_dim, latent_dim)


def fuse_layer_weights(coef, scale_sp, scale_base):
    """Pre-fuse one layer (Din -> Dout) into (Dout, Din//8, NFEAT*8).

    Column order matches the kernel's per-row-group feature build:
      (group g, feature f, row r)  with f=0 the silu/base path, f=m+1 basis m.
    The Cox-de Boor normalization SPLINE_NORM is folded into the spline blocks
    so the kernel recursion carries no per-level '* 1/(d*h)' multiplies.
    """
    din, dout, _ = coef.shape
    assert din % ROW_GROUP == 0, "pad Din to a multiple of 8 for aligned row groups"
    sp = jnp.transpose(coef * scale_sp[:, :, None], (0, 2, 1)) * SPLINE_NORM  # (Din, NBASIS, Dout)
    w = jnp.concatenate([scale_base[:, None, :], sp], axis=1)                  # (Din, NFEAT, Dout)
    g = din // ROW_GROUP
    w = w.reshape(g, ROW_GROUP, NFEAT, dout)                                   # (G, R, NFEAT, Dout)
    w = jnp.transpose(w, (0, 2, 1, 3))                                         # (G, NFEAT, R, Dout)
    w = w.reshape(g, NFEAT * ROW_GROUP, dout)                                  # (G, NFEAT*R, Dout)
    return jnp.transpose(w, (2, 0, 1))                                         # (Dout, G, NFEAT*R)


def fuse_params(raw_params):
    l1, l2 = raw_params
    return fuse_layer_weights(*l1), fuse_layer_weights(*l2)


# ------------------------------ pure-JAX reference ----------------------------
def _bspline_bases_ref(x):
    """Standard NORMALIZED Cox-de Boor recursion (per-level divisions).

    Used only by the reference, so the kernel's constant-folding, weight fusion
    and step-function order-0 construction are genuinely validated against it.
    """
    t = _knots()
    nk = len(t)
    one = jnp.ones((), x.dtype)
    zero = jnp.zeros((), x.dtype)
    bases = [jnp.where((x >= t[m]) & (x < t[m + 1]), one, zero) for m in range(nk - 1)]
    for d in range(1, ORDER + 1):
        bases = [
            (x - t[m]) / (t[m + d] - t[m]) * bases[m]
            + (t[m + d + 1] - x) / (t[m + d + 1] - t[m + 1]) * bases[m + 1]
            for m in range(len(bases) - 1)
        ]
    assert len(bases) == NBASIS
    return bases


def _ref_forward(z, raw_params):
    """Reference uses the *unfused* parameters and the normalized recursion, so
    it also validates the wrapper-side fusion, reordering and norm folding."""
    (c1, s1, b1), (c2, s2, b2) = raw_params

    def layer(x, coef, scale_sp, scale_base):
        acc = (x * jax.nn.sigmoid(x)) @ scale_base
        bases = jnp.stack(_bspline_bases_ref(x), axis=0)              # (M, B, Din)
        return acc + jnp.einsum('mbi,iom,io->bo', bases, coef, scale_sp)

    h = layer(z.astype(jnp.float32), c1, s1, b1)
    return layer(h, c2, s2, b2)


# ---------------------------------- main --------------------------------------
if __name__ == "__main__":
    BATCH = 8
    LATENT_DIM = 8    # args.latent_dim
    HIDDEN_DIM = 32   # args.hidden_dim

    key = jax.random.PRNGKey(0)
    kz, kp = jax.random.split(key)

    z = jax.random.normal(kz, (BATCH, LATENT_DIM), jnp.float32)
    t = jnp.float32(0.0)                   # unused by the dynamics function
    raw_params = init_kan_params(kp, LATENT_DIM, HIDDEN_DIM)
    fused_params = fuse_params(raw_params)

    out = jax.block_until_ready(ode_function_forward(t, z, fused_params))
    ref = jax.block_until_ready(_ref_forward(z, raw_params))

    assert out.shape == (BATCH, LATENT_DIM)
    assert jnp.allclose(out, ref, rtol=1e-4, atol=1e-4), "Pallas kernel mismatch vs reference"

    print("KERNEL_OK")
</pallas_src>

<mosaic_0001>
module attributes {stable_mosaic.version = 11 : i64} {
  func.func @_kan_ode_kernel(%arg0: i32, %arg1: memref<8x128xf32, #tpu.memory_space<vmem>>, %arg2: memref<32x1x72xf32, #tpu.memory_space<vmem>>, %arg3: memref<8x4x72xf32, #tpu.memory_space<vmem>>, %arg4: memref<8x128xf32, #tpu.memory_space<vmem>>) attributes {dimension_semantics = [#tpu.dimension_semantics<parallel>], iteration_bounds = array<i64: 1>, scalar_prefetch = 0 : i64, scratch_operands = 0 : i64, tpu.core_type = #tpu.core_type<tc>, window_params = [{transform_indices = @transform_0, window_bounds = array<i64: 8, 128>}, {pipeline_mode = #tpu.pipeline_mode<synchronous>, transform_indices = @transform_1, window_bounds = array<i64: 32, 1, 72>}, {pipeline_mode = #tpu.pipeline_mode<synchronous>, transform_indices = @transform_2, window_bounds = array<i64: 8, 4, 72>}, {transform_indices = @transform_3, window_bounds = array<i64: 8, 128>}]} {
    %c0 = arith.constant 0 : index
    %c0_0 = arith.constant 0 : index
    %0 = vector.load %arg1[%c0, %c0_0] : memref<8x128xf32, #tpu.memory_space<vmem>>, vector<8x128xf32>
    %cst = arith.constant 0.000000e+00 : f32
    %1 = vector.broadcast %cst : f32 to vector<8x128xf32>
    %2 = arith.subf %1, %0 : vector<8x128xf32>
    %3 = math.exp %2 : vector<8x128xf32>
    %cst_1 = arith.constant 1.000000e+00 : f32
    %4 = vector.broadcast %cst_1 : f32 to vector<8x128xf32>
    %5 = arith.addf %4, %3 : vector<8x128xf32>
    %6 = tpu.reciprocal %5 : vector<8x128xf32> -> vector<8x128xf32>
    %7 = arith.mulf %0, %6 : vector<8x128xf32>
    %cst_2 = arith.constant -2.200000e+00 : f32
    %8 = vector.broadcast %cst_2 : f32 to vector<8x128xf32>
    %9 = arith.cmpf oge, %0, %8 : vector<8x128xf32>
    %10 = arith.extui %9 : vector<8x128xi1> to vector<8x128xi32>
    %11 = arith.sitofp %10 : vector<8x128xi32> to vector<8x128xf32>
    %cst_3 = arith.constant -1.800000e+00 : f32
    %12 = vector.broadcast %cst_3 : f32 to vector<8x128xf32>
    %13 = arith.cmpf oge, %0, %12 : vector<8x128xf32>
    %14 = arith.extui %13 : vector<8x128xi1> to vector<8x128xi32>
    %15 = arith.sitofp %14 : vector<8x128xi32> to vector<8x128xf32>
    %16 = arith.subf %11, %15 : vector<8x128xf32>
    %cst_4 = arith.constant -1.400000e+00 : f32
    %17 = vector.broadcast %cst_4 : f32 to vector<8x128xf32>
    %18 = arith.cmpf oge, %0, %17 : vector<8x128xf32>
    %19 = arith.extui %18 : vector<8x128xi1> to vector<8x128xi32>
    %20 = arith.sitofp %19 : vector<8x128xi32> to vector<8x128xf32>
    %21 = arith.subf %15, %20 : vector<8x128xf32>
    %cst_5 = arith.constant -1.000000e+00 : f32
    %22 = vector.broadcast %cst_5 : f32 to vector<8x128xf32>
    %23 = arith.cmpf oge, %0, %22 : vector<8x128xf32>
    %24 = arith.extui %23 : vector<8x128xi1> to vector<8x128xi32>
    %25 = arith.sitofp %24 : vector<8x128xi32> to vector<8x128xf32>
    %26 = arith.subf %20, %25 : vector<8x128xf32>
    %cst_6 = arith.constant -6.000000e-01 : f32
    %27 = vector.broadcast %cst_6 : f32 to vector<8x128xf32>
    %28 = arith.cmpf oge, %0, %27 : vector<8x128xf32>
    %29 = arith.extui %28 : vector<8x128xi1> to vector<8x128xi32>
    %30 = arith.sitofp %29 : vector<8x128xi32> to vector<8x128xf32>
    %31 = arith.subf %25, %30 : vector<8x128xf32>
    %cst_7 = arith.constant -2.000000e-01 : f32
    %32 = vector.broadcast %cst_7 : f32 to vector<8x128xf32>
    %33 = arith.cmpf oge, %0, %32 : vector<8x128xf32>
    %34 = arith.extui %33 : vector<8x128xi1> to vector<8x128xi32>
    %35 = arith.sitofp %34 : vector<8x128xi32> to vector<8x128xf32>
    %36 = arith.subf %30, %35 : vector<8x128xf32>
    %cst_8 = arith.constant 2.000000e-01 : f32
    %37 = vector.broadcast %cst_8 : f32 to vector<8x128xf32>
    %38 = arith.cmpf oge, %0, %37 : vector<8x128xf32>
    %39 = arith.extui %38 : vector<8x128xi1> to vector<8x128xi32>
    %40 = arith.sitofp %39 : vector<8x128xi32> to vector<8x128xf32>
    %41 = arith.subf %35, %40 : vector<8x128xf32>
    %cst_9 = arith.constant 6.000000e-01 : f32
    %42 = vector.broadcast %cst_9 : f32 to vector<8x128xf32>
    %43 = arith.cmpf oge, %0, %42 : vector<8x128xf32>
    %44 = arith.extui %43 : vector<8x128xi1> to vector<8x128xi32>
    %45 = arith.sitofp %44 : vector<8x128xi32> to vector<8x128xf32>
    %46 = arith.subf %40, %45 : vector<8x128xf32>
    %cst_10 = arith.constant 1.000000e+00 : f32
    %47 = vector.broadcast %cst_10 : f32 to vector<8x128xf32>
    %48 = arith.cmpf oge, %0, %47 : vector<8x128xf32>
    %49 = arith.extui %48 : vector<8x128xi1> to vector<8x128xi32>
    %50 = arith.sitofp %49 : vector<8x128xi32> to vector<8x128xf32>
    %51 = arith.subf %45, %50 : vector<8x128xf32>
    %cst_11 = arith.constant 1.400000e+00 : f32
    %52 = vector.broadcast %cst_11 : f32 to vector<8x128xf32>
    %53 = arith.cmpf oge, %0, %52 : vector<8x128xf32>
    %54 = arith.extui %53 : vector<8x128xi1> to vector<8x128xi32>
    %55 = arith.sitofp %54 : vector<8x128xi32> to vector<8x128xf32>
    %56 = arith.subf %50, %55 : vector<8x128xf32>
    %cst_12 = arith.constant 1.800000e+00 : f32
    %57 = vector.broadcast %cst_12 : f32 to vector<8x128xf32>
    %58 = arith.cmpf oge, %0, %57 : vector<8x128xf32>
    %59 = arith.extui %58 : vector<8x128xi1> to vector<8x128xi32>
    %60 = arith.sitofp %59 : vector<8x128xi32> to vector<8x128xf32>
    %61 = arith.subf %55, %60 : vector<8x128xf32>
    %cst_13 = arith.constant 2.200000e+00 : f32
    %62 = vector.broadcast %cst_13 : f32 to vector<8x128xf32>
    %63 = arith.cmpf oge, %0, %62 : vector<8x128xf32>
    %64 = arith.extui %63 : vector<8x128xi1> to vector<8x128xi32>
    %65 = arith.sitofp %64 : vector<8x128xi32> to vector<8x128xf32>
    %66 = arith.subf %60, %65 : vector<8x128xf32>
    %cst_14 = arith.constant -2.200000e+00 : f32
    %67 = vector.broadcast %cst_14 : f32 to vector<8x128xf32>
    %68 = arith.subf %0, %67 : vector<8x128xf32>
    %cst_15 = arith.constant -1.800000e+00 : f32
    %69 = vector.broadcast %cst_15 : f32 to vector<8x128xf32>
    %70 = arith.subf %0, %69 : vector<8x128xf32>
    %cst_16 = arith.constant -1.400000e+00 : f32
    %71 = vector.broadcast %cst_16 : f32 to vector<8x128xf32>
    %72 = arith.subf %0, %71 : vector<8x128xf32>
    %cst_17 = arith.constant -1.000000e+00 : f32
    %73 = vector.broadcast %cst_17 : f32 to vector<8x128xf32>
    %74 = arith.subf %0, %73 : vector<8x128xf32>
    %cst_18 = arith.constant -6.000000e-01 : f32
    %75 = vector.broadcast %cst_18 : f32 to vector<8x128xf32>
    %76 = arith.subf %0, %75 : vector<8x128xf32>
    %cst_19 = arith.constant -2.000000e-01 : f32
    %77 = vector.broadcast %cst_19 : f32 to vector<8x128xf32>
    %78 = arith.subf %0, %77 : vector<8x128xf32>
    %cst_20 = arith.constant 2.000000e-01 : f32
    %79 = vector.broadcast %cst_20 : f32 to vector<8x128xf32>
    %80 = arith.subf %0, %79 : vector<8x128xf32>
    %cst_21 = arith.constant 6.000000e-01 : f32
    %81 = vector.broadcast %cst_21 : f32 to vector<8x128xf32>
    %82 = arith.subf %0, %81 : vector<8x128xf32>
    %cst_22 = arith.constant 1.000000e+00 : f32
    %83 = vector.broadcast %cst_22 : f32 to vector<8x128xf32>
    %84 = arith.subf %0, %83 : vector<8x128xf32>
    %cst_23 = arith.constant 1.400000e+00 : f32
    %85 = vector.broadcast %cst_23 : f32 to vector<8x128xf32>
    %86 = arith.subf %0, %85 : vector<8x128xf32>
    %cst_24 = arith.constant 1.800000e+00 : f32
    %87 = vector.broadcast %cst_24 : f32 to vector<8x128xf32>
    %88 = arith.subf %0, %87 : vector<8x128xf32>
    %cst_25 = arith.constant 2.200000e+00 : f32
    %89 = vector.broadcast %cst_25 : f32 to vector<8x128xf32>
    %90 = arith.subf %0, %89 : vector<8x128xf32>
    %91 = arith.mulf %68, %16 : vector<8x128xf32>
    %92 = arith.mulf %72, %21 : vector<8x128xf32>
    %93 = arith.subf %91, %92 : vector<8x128xf32>
    %94 = arith.mulf %70, %21 : vector<8x128xf32>
    %95 = arith.mulf %74, %26 : vector<8x128xf32>
    %96 = arith.subf %94, %95 : vector<8x128xf32>
    %97 = arith.mulf %72, %26 : vector<8x128xf32>
    %98 = arith.mulf %76, %31 : vector<8x128xf32>
    %99 = arith.subf %97, %98 : vector<8x128xf32>
    %100 = arith.mulf %74, %31 : vector<8x128xf32>
    %101 = arith.mulf %78, %36 : vector<8x128xf32>
    %102 = arith.subf %100, %101 : vector<8x128xf32>
    %103 = arith.mulf %76, %36 : vector<8x128xf32>
    %104 = arith.mulf %80, %41 : vector<8x128xf32>
    %105 = arith.subf %103, %104 : vector<8x128xf32>
    %106 = arith.mulf %78, %41 : vector<8x128xf32>
    %107 = arith.mulf %82, %46 : vector<8x128xf32>
    %108 = arith.subf %106, %107 : vector<8x128xf32>
    %109 = arith.mulf %80, %46 : vector<8x128xf32>
    %110 = arith.mulf %84, %51 : vector<8x128xf32>
    %111 = arith.subf %109, %110 : vector<8x128xf32>
    %112 = arith.mulf %82, %51 : vector<8x128xf32>
    %113 = arith.mulf %86, %56 : vector<8x128xf32>
    %114 = arith.subf %112, %113 : vector<8x128xf32>
    %115 = arith.mulf %84, %56 : vector<8x128xf32>
    %116 = arith.mulf %88, %61 : vector<8x128xf32>
    %117 = arith.subf %115, %116 : vector<8x128xf32>
    %118 = arith.mulf %86, %61 : vector<8x128xf32>
    %119 = arith.mulf %90, %66 : vector<8x128xf32>
    %120 = arith.subf %118, %119 : vector<8x128xf32>
    %121 = arith.mulf %68, %93 : vector<8x128xf32>
    %122 = arith.mulf %74, %96 : vector<8x128xf32>
    %123 = arith.subf %121, %122 : vector<8x128xf32>
    %124 = arith.mulf %70, %96 : vector<8x128xf32>
    %125 = arith.mulf %76, %99 : vector<8x128xf32>
    %126 = arith.subf %124, %125 : vector<8x128xf32>
    %127 = arith.mulf %72, %99 : vector<8x128xf32>
    %128 = arith.mulf %78, %102 : vector<8x128xf32>
    %129 = arith.subf %127, %128 : vector<8x128xf32>
    %130 = arith.mulf %74, %102 : vector<8x128xf32>
    %131 = arith.mulf %80, %105 : vector<8x128xf32>
    %132 = arith.subf %130, %131 : vector<8x128xf32>
    %133 = arith.mulf %76, %105 : vector<8x128xf32>
    %134 = arith.mulf %82, %108 : vector<8x128xf32>
    %135 = arith.subf %133, %134 : vector<8x128xf32>
    %136 = arith.mulf %78, %108 : vector<8x128xf32>
    %137 = arith.mulf %84, %111 : vector<8x128xf32>
    %138 = arith.subf %136, %137 : vector<8x128xf32>
    %139 = arith.mulf %80, %111 : vector<8x128xf32>
    %140 = arith.mulf %86, %114 : vector<8x128xf32>
    %141 = arith.subf %139, %140 : vector<8x128xf32>
    %142 = arith.mulf %82, %114 : vector<8x128xf32>
    %143 = arith.mulf %88, %117 : vector<8x128xf32>
    %144 = arith.subf %142, %143 : vector<8x128xf32>
    %145 = arith.mulf %84, %117 : vector<8x128xf32>
    %146 = arith.mulf %90, %120 : vector<8x128xf32>
    %147 = arith.subf %145, %146 : vector<8x128xf32>
    %148 = arith.mulf %68, %123 : vector<8x128xf32>
    %149 = arith.mulf %76, %126 : vector<8x128xf32>
    %150 = arith.subf %148, %149 : vector<8x128xf32>
    %151 = arith.mulf %70, %126 : vector<8x128xf32>
    %152 = arith.mulf %78, %129 : vector<8x128xf32>
    %153 = arith.subf %151, %152 : vector<8x128xf32>
    %154 = arith.mulf %72, %129 : vector<8x128xf32>
    %155 = arith.mulf %80, %132 : vector<8x128xf32>
    %156 = arith.subf %154, %155 : vector<8x128xf32>
    %157 = arith.mulf %74, %132 : vector<8x128xf32>
    %158 = arith.mulf %82, %135 : vector<8x128xf32>
    %159 = arith.subf %157, %158 : vector<8x128xf32>
    %160 = arith.mulf %76, %135 : vector<8x128xf32>
    %161 = arith.mulf %84, %138 : vector<8x128xf32>
    %162 = arith.subf %160, %161 : vector<8x128xf32>
    %163 = arith.mulf %78, %138 : vector<8x128xf32>
    %164 = arith.mulf %86, %141 : vector<8x128xf32>
    %165 = arith.subf %163, %164 : vector<8x128xf32>
    %166 = arith.mulf %80, %141 : vector<8x128xf32>
    %167 = arith.mulf %88, %144 : vector<8x128xf32>
    %168 = arith.subf %166, %167 : vector<8x128xf32>
    %169 = arith.mulf %82, %144 : vector<8x128xf32>
    %170 = arith.mulf %90, %147 : vector<8x128xf32>
    %171 = arith.subf %169, %170 : vector<8x128xf32>
    %172 = tpu.concatenate %7, %150, %153, %156, %159, %162, %165, %168, %171 in 0 : vector<8x128xf32>, vector<8x128xf32>, vector<8x128xf32>, vector<8x128xf32>, vector<8x128xf32>, vector<8x128xf32>, vector<8x128xf32>, vector<8x128xf32>, vector<8x128xf32> -> vector<72x128xf32>
    %c0_26 = arith.constant 0 : index
    %c0_27 = arith.constant 0 : index
    %c0_28 = arith.constant 0 : index
    %173 = vector.load %arg2[%c0_26, %c0_27, %c0_28] : memref<32x1x72xf32, #tpu.memory_space<vmem>>, vector<32x1x72xf32>
    %174 = vector.shape_cast %173 : vector<32x1x72xf32> to vector<32x72xf32>
    %cst_29 = arith.constant dense<0.000000e+00> : vector<32x128xf32>
    %175 = tpu.matmul %174, %172, %cst_29 {dimension_numbers = #tpu.dot_dimension_numbers<[1], [0], [0], [1], [0, 0, 1, 1], [], []>} : vector<32x72xf32>, vector<72x128xf32>, vector<32x128xf32> -> vector<32x128xf32>
    %176 = vector.extract_strided_slice %175 {offsets = [0, 0], sizes = [8, 128], strides = [1, 1]} : vector<32x128xf32> to vector<8x128xf32>
    %cst_30 = arith.constant 0.000000e+00 : f32
    %177 = vector.broadcast %cst_30 : f32 to vector<8x128xf32>
    %178 = arith.subf %177, %176 : vector<8x128xf32>
    %179 = math.exp %178 : vector<8x128xf32>
    %cst_31 = arith.constant 1.000000e+00 : f32
    %180 = vector.broadcast %cst_31 : f32 to vector<8x128xf32>
    %181 = arith.addf %180, %179 : vector<8x128xf32>
    %182 = tpu.reciprocal %181 : vector<8x128xf32> -> vector<8x128xf32>
    %183 = arith.mulf %176, %182 : vector<8x128xf32>
    %cst_32 = arith.constant -2.200000e+00 : f32
    %184 = vector.broadcast %cst_32 : f32 to vector<8x128xf32>
    %185 = arith.cmpf oge, %176, %184 : vector<8x128xf32>
    %186 = arith.extui %185 : vector<8x128xi1> to vector<8x128xi32>
    %187 = arith.sitofp %186 : vector<8x128xi32> to vector<8x128xf32>
    %cst_33 = arith.constant -1.800000e+00 : f32
    %188 = vector.broadcast %cst_33 : f32 to vector<8x128xf32>
    %189 = arith.cmpf oge, %176, %188 : vector<8x128xf32>
    %190 = arith.extui %189 : vector<8x128xi1> to vector<8x128xi32>
    %191 = arith.sitofp %190 : vector<8x128xi32> to vector<8x128xf32>
    %192 = arith.subf %187, %191 : vector<8x128xf32>
    %cst_34 = arith.constant -1.400000e+00 : f32
    %193 = vector.broadcast %cst_34 : f32 to vector<8x128xf32>
    %194 = arith.cmpf oge, %176, %193 : vector<8x128xf32>
    %195 = arith.extui %194 : vector<8x128xi1> to vector<8x128xi32>
    %196 = arith.sitofp %195 : vector<8x128xi32> to vector<8x128xf32>
    %197 = arith.subf %191, %196 : vector<8x128xf32>
    %cst_35 = arith.constant -1.000000e+00 : f32
    %198 = vector.broadcast %cst_35 : f32 to vector<8x128xf32>
    %199 = arith.cmpf oge, %176, %198 : vector<8x128xf32>
    %200 = arith.extui %199 : vector<8x128xi1> to vector<8x128xi32>
    %201 = arith.sitofp %200 : vector<8x128xi32> to vector<8x128xf32>
    %202 = arith.subf %196, %201 : vector<8x128xf32>
    %cst_36 = arith.constant -6.000000e-01 : f32
    %203 = vector.broadcast %cst_36 : f32 to vector<8x128xf32>
    %204 = arith.cmpf oge, %176, %203 : vector<8x128xf32>
    %205 = arith.extui %204 : vector<8x128xi1> to vector<8x128xi32>
    %206 = arith.sitofp %205 : vector<8x128xi32> to vector<8x128xf32>
    %207 = arith.subf %201, %206 : vector<8x128xf32>
    %cst_37 = arith.constant -2.000000e-01 : f32
    %208 = vector.broadcast %cst_37 : f32 to vector<8x128xf32>
    %209 = arith.cmpf oge, %176, %208 : vector<8x128xf32>
    %210 = arith.extui %209 : vector<8x128xi1> to vector<8x128xi32>
    %211 = arith.sitofp %210 : vector<8x128xi32> to vector<8x128xf32>
    %212 = arith.subf %206, %211 : vector<8x128xf32>
    %cst_38 = arith.constant 2.000000e-01 : f32
    %213 = vector.broadcast %cst_38 : f32 to vector<8x128xf32>
    %214 = arith.cmpf oge, %176, %213 : vector<8x128xf32>
    %215 = arith.extui %214 : vector<8x128xi1> to vector<8x128xi32>
    %216 = arith.sitofp %215 : vector<8x128xi32> to vector<8x128xf32>
    %217 = arith.subf %211, %216 : vector<8x128xf32>
    %cst_39 = arith.constant 6.000000e-01 : f32
    %218 = vector.broadcast %cst_39 : f32 to vector<8x128xf32>
    %219 = arith.cmpf oge, %176, %218 : vector<8x128xf32>
    %220 = arith.extui %219 : vector<8x128xi1> to vector<8x128xi32>
    %221 = arith.sitofp %220 : vector<8x128xi32> to vector<8x128xf32>
    %222 = arith.subf %216, %221 : vector<8x128xf32>
    %cst_40 = arith.constant 1.000000e+00 : f32
    %223 = vector.broadcast %cst_40 : f32 to vector<8x128xf32>
    %224 = arith.cmpf oge, %176, %223 : vector<8x128xf32>
    %225 = arith.extui %224 : vector<8x128xi1> to vector<8x128xi32>
    %226 = arith.sitofp %225 : vector<8x128xi32> to vector<8x128xf32>
    %227 = arith.subf %221, %226 : vector<8x128xf32>
    %cst_41 = arith.constant 1.400000e+00 : f32
    %228 = vector.broadcast %cst_41 : f32 to vector<8x128xf32>
    %229 = arith.cmpf oge, %176, %228 : vector<8x128xf32>
    %230 = arith.extui %229 : vector<8x128xi1> to vector<8x128xi32>
    %231 = arith.sitofp %230 : vector<8x128xi32> to vector<8x128xf32>
    %232 = arith.subf %226, %231 : vector<8x128xf32>
    %cst_42 = arith.constant 1.800000e+00 : f32
    %233 = vector.broadcast %cst_42 : f32 to vector<8x128xf32>
    %234 = arith.cmpf oge, %176, %233 : vector<8x128xf32>
    %235 = arith.extui %234 : vector<8x128xi1> to vector<8x128xi32>
    %236 = arith.sitofp %235 : vector<8x128xi32> to vector<8x128xf32>
    %237 = arith.subf %231, %236 : vector<8x128xf32>
    %cst_43 = arith.constant 2.200000e+00 : f32
    %238 = vector.broadcast %cst_43 : f32 to vector<8x128xf32>
    %239 = arith.cmpf oge, %176, %238 : vector<8x128xf32>
    %240 = arith.extui %239 : vector<8x128xi1> to vector<8x128xi32>
    %241 = arith.sitofp %240 : vector<8x128xi32> to vector<8x128xf32>
    %242 = arith.subf %236, %241 : vector<8x128xf32>
    %cst_44 = arith.constant -2.200000e+00 : f32
    %243 = vector.broadcast %cst_44 : f32 to vector<8x128xf32>
    %244 = arith.subf %176, %243 : vector<8x128xf32>
    %cst_45 = arith.constant -1.800000e+00 : f32
    %245 = vector.broadcast %cst_45 : f32 to vector<8x128xf32>
    %246 = arith.subf %176, %245 : vector<8x128xf32>
    %cst_46 = arith.constant -1.400000e+00 : f32
    %247 = vector.broadcast %cst_46 : f32 to vector<8x128xf32>
    %248 = arith.subf %176, %247 : vector<8x128xf32>
    %cst_47 = arith.constant -1.000000e+00 : f32
    %249 = vector.broadcast %cst_47 : f32 to vector<8x128xf32>
    %250 = arith.subf %176, %249 : vector<8x128xf32>
    %cst_48 = arith.constant -6.000000e-01 : f32
    %251 = vector.broadcast %cst_48 : f32 to vector<8x128xf32>
    %252 = arith.subf %176, %251 : vector<8x128xf32>
    %cst_49 = arith.constant -2.000000e-01 : f32
    %253 = vector.broadcast %cst_49 : f32 to vector<8x128xf32>
    %254 = arith.subf %176, %253 : vector<8x128xf32>
    %cst_50 = arith.constant 2.000000e-01 : f32
    %255 = vector.broadcast %cst_50 : f32 to vector<8x128xf32>
    %256 = arith.subf %176, %255 : vector<8x128xf32>
    %cst_51 = arith.constant 6.000000e-01 : f32
    %257 = vector.broadcast %cst_51 : f32 to vector<8x128xf32>
    %258 = arith.subf %176, %257 : vector<8x128xf32>
    %cst_52 = arith.constant 1.000000e+00 : f32
    %259 = vector.broadcast %cst_52 : f32 to vector<8x128xf32>
    %260 = arith.subf %176, %259 : vector<8x128xf32>
    %cst_53 = arith.constant 1.400000e+00 : f32
    %261 = vector.broadcast %cst_53 : f32 to vector<8x128xf32>
    %262 = arith.subf %176, %261 : vector<8x128xf32>
    %cst_54 = arith.constant 1.800000e+00 : f32
    %263 = vector.broadcast %cst_54 : f32 to vector<8x128xf32>
    %264 = arith.subf %176, %263 : vector<8x128xf32>
    %cst_55 = arith.constant 2.200000e+00 : f32
    %265 = vector.broadcast %cst_55 : f32 to vector<8x128xf32>
    %266 = arith.subf %176, %265 : vector<8x128xf32>
    %267 = arith.mulf %244, %192 : vector<8x128xf32>
    %268 = arith.mulf %248, %197 : vector<8x128xf32>
    %269 = arith.subf %267, %268 : vector<8x128xf32>
    %270 = arith.mulf %246, %197 : vector<8x128xf32>
    %271 = arith.mulf %250, %202 : vector<8x128xf32>
    %272 = arith.subf %270, %271 : vector<8x128xf32>
    %273 = arith.mulf %248, %202 : vector<8x128xf32>
    %274 = arith.mulf %252, %207 : vector<8x128xf32>
    %275 = arith.subf %273, %274 : vector<8x128xf32>
    %276 = arith.mulf %250, %207 : vector<8x128xf32>
    %277 = arith.mulf %254, %212 : vector<8x128xf32>
    %278 = arith.subf %276, %277 : vector<8x128xf32>
    %279 = arith.mulf %252, %212 : vector<8x128xf32>
    %280 = arith.mulf %256, %217 : vector<8x128xf32>
    %281 = arith.subf %279, %280 : vector<8x128xf32>
    %282 = arith.mulf %254, %217 : vector<8x128xf32>
    %283 = arith.mulf %258, %222 : vector<8x128xf32>
    %284 = arith.subf %282, %283 : vector<8x128xf32>
    %285 = arith.mulf %256, %222 : vector<8x128xf32>
    %286 = arith.mulf %260, %227 : vector<8x128xf32>
    %287 = arith.subf %285, %286 : vector<8x128xf32>
    %288 = arith.mulf %258, %227 : vector<8x128xf32>
    %289 = arith.mulf %262, %232 : vector<8x128xf32>
    %290 = arith.subf %288, %289 : vector<8x128xf32>
    %291 = arith.mulf %260, %232 : vector<8x128xf32>
    %292 = arith.mulf %264, %237 : vector<8x128xf32>
    %293 = arith.subf %291, %292 : vector<8x128xf32>
    %294 = arith.mulf %262, %237 : vector<8x128xf32>
    %295 = arith.mulf %266, %242 : vector<8x128xf32>
    %296 = arith.subf %294, %295 : vector<8x128xf32>
    %297 = arith.mulf %244, %269 : vector<8x128xf32>
    %298 = arith.mulf %250, %272 : vector<8x128xf32>
    %299 = arith.subf %297, %298 : vector<8x128xf32>
    %300 = arith.mulf %246, %272 : vector<8x128xf32>
    %301 = arith.mulf %252, %275 : vector<8x128xf32>
    %302 = arith.subf %300, %301 : vector<8x128xf32>
    %303 = arith.mulf %248, %275 : vector<8x128xf32>
    %304 = arith.mulf %254, %278 : vector<8x128xf32>
    %305 = arith.subf %303, %304 : vector<8x128xf32>
    %306 = arith.mulf %250, %278 : vector<8x128xf32>
    %307 = arith.mulf %256, %281 : vector<8x128xf32>
    %308 = arith.subf %306, %307 : vector<8x128xf32>
    %309 = arith.mulf %252, %281 : vector<8x128xf32>
    %310 = arith.mulf %258, %284 : vector<8x128xf32>
    %311 = arith.subf %309, %310 : vector<8x128xf32>
    %312 = arith.mulf %254, %284 : vector<8x128xf32>
    %313 = arith.mulf %260, %287 : vector<8x128xf32>
    %314 = arith.subf %312, %313 : vector<8x128xf32>
    %315 = arith.mulf %256, %287 : vector<8x128xf32>
    %316 = arith.mulf %262, %290 : vector<8x128xf32>
    %317 = arith.subf %315, %316 : vector<8x128xf32>
    %318 = arith.mulf %258, %290 : vector<8x128xf32>
    %319 = arith.mulf %264, %293 : vector<8x128xf32>
    %320 = arith.subf %318, %319 : vector<8x128xf32>
    %321 = arith.mulf %260, %293 : vector<8x128xf32>
    %322 = arith.mulf %266, %296 : vector<8x128xf32>
    %323 = arith.subf %321, %322 : vector<8x128xf32>
    %324 = arith.mulf %244, %299 : vector<8x128xf32>
    %325 = arith.mulf %252, %302 : vector<8x128xf32>
    %326 = arith.subf %324, %325 : vector<8x128xf32>
    %327 = arith.mulf %246, %302 : vector<8x128xf32>
    %328 = arith.mulf %254, %305 : vector<8x128xf32>
    %329 = arith.subf %327, %328 : vector<8x128xf32>
    %330 = arith.mulf %248, %305 : vector<8x128xf32>
    %331 = arith.mulf %256, %308 : vector<8x128xf32>
    %332 = arith.subf %330, %331 : vector<8x128xf32>
    %333 = arith.mulf %250, %308 : vector<8x128xf32>
    %334 = arith.mulf %258, %311 : vector<8x128xf32>
    %335 = arith.subf %333, %334 : vector<8x128xf32>
    %336 = arith.mulf %252, %311 : vector<8x128xf32>
    %337 = arith.mulf %260, %314 : vector<8x128xf32>
    %338 = arith.subf %336, %337 : vector<8x128xf32>
    %339 = arith.mulf %254, %314 : vector<8x128xf32>
    %340 = arith.mulf %262, %317 : vector<8x128xf32>
    %341 = arith.subf %339, %340 : vector<8x128xf32>
    %342 = arith.mulf %256, %317 : vector<8x128xf32>
    %343 = arith.mulf %264, %320 : vector<8x128xf32>
    %344 = arith.subf %342, %343 : vector<8x128xf32>
    %345 = arith.mulf %258, %320 : vector<8x128xf32>
    %346 = arith.mulf %266, %323 : vector<8x128xf32>
    %347 = arith.subf %345, %346 : vector<8x128xf32>
    %348 = tpu.concatenate %183, %326, %329, %332, %335, %338, %341, %344, %347 in 0 : vector<8x128xf32>, vector<8x128xf32>, vector<8x128xf32>, vector<8x128xf32>, vector<8x128xf32>, vector<8x128xf32>, vector<8x128xf32>, vector<8x128xf32>, vector<8x128xf32> -> vector<72x128xf32>
    %c0_56 = arith.constant 0 : index
    %c0_57 = arith.constant 0 : index
    %c0_58 = arith.constant 0 : index
    %349 = vector.load %arg3[%c0_56, %c0_57, %c0_58] : memref<8x4x72xf32, #tpu.memory_space<vmem>>, vector<8x1x72xf32>
    %350 = vector.shape_cast %349 : vector<8x1x72xf32> to vector<8x72xf32>
    %cst_59 = arith.constant dense<0.000000e+00> : vector<8x128xf32>
    %351 = tpu.matmul %350, %348, %cst_59 {dimension_numbers = #tpu.dot_dimension_numbers<[1], [0], [0], [1], [0, 0, 1, 1], [], []>} : vector<8x72xf32>, vector<72x128xf32>, vector<8x128xf32> -> vector<8x128xf32>
    %352 = vector.extract_strided_slice %175 {offsets = [8, 0], sizes = [8, 128], strides = [1, 1]} : vector<32x128xf32> to vector<8x128xf32>
    %cst_60 = arith.constant 0.000000e+00 : f32
    %353 = vector.broadcast %cst_60 : f32 to vector<8x128xf32>
    %354 = arith.subf %353, %352 : vector<8x128xf32>
    %355 = math.exp %354 : vector<8x128xf32>
    %cst_61 = arith.constant 1.000000e+00 : f32
    %356 = vector.broadcast %cst_61 : f32 to vector<8x128xf32>
    %357 = arith.addf %356, %355 : vector<8x128xf32>
    %358 = tpu.reciprocal %357 : vector<8x128xf32> -> vector<8x128xf32>
    %359 = arith.mulf %352, %358 : vector<8x128xf32>
    %cst_62 = arith.constant -2.200000e+00 : f32
    %360 = vector.broadcast %cst_62 : f32 to vector<8x128xf32>
    %361 = arith.cmpf oge, %352, %360 : vector<8x128xf32>
    %362 = arith.extui %361 : vector<8x128xi1> to vector<8x128xi32>
    %363 = arith.sitofp %362 : vector<8x128xi32> to vector<8x128xf32>
    %cst_63 = arith.constant -1.800000e+00 : f32
    %364 = vector.broadcast %cst_63 : f32 to vector<8x128xf32>
    %365 = arith.cmpf oge, %352, %364 : vector<8x128xf32>
    %366 = arith.extui %365 : vector<8x128xi1> to vector<8x128xi32>
    %367 = arith.sitofp %366 : vector<8x128xi32> to vector<8x128xf32>
    %368 = arith.subf %363, %367 : vector<8x128xf32>
    %cst_64 = arith.constant -1.400000e+00 : f32
    %369 = vector.broadcast %cst_64 : f32 to vector<8x128xf32>
    %370 = arith.cmpf oge, %352, %369 : vector<8x128xf32>
    %371 = arith.extui %370 : vector<8x128xi1> to vector<8x128xi32>
    %372 = arith.sitofp %371 : vector<8x128xi32> to vector<8x128xf32>
    %373 = arith.subf %367, %372 : vector<8x128xf32>
    %cst_65 = arith.constant -1.000000e+00 : f32
    %374 = vector.broadcast %cst_65 : f32 to vector<8x128xf32>
    %375 = arith.cmpf oge, %352, %374 : vector<8x128xf32>
    %376 = arith.extui %375 : vector<8x128xi1> to vector<8x128xi32>
    %377 = arith.sitofp %376 : vector<8x128xi32> to vector<8x128xf32>
    %378 = arith.subf %372, %377 : vector<8x128xf32>
    %cst_66 = arith.constant -6.000000e-01 : f32
    %379 = vector.broadcast %cst_66 : f32 to vector<8x128xf32>
    %380 = arith.cmpf oge, %352, %379 : vector<8x128xf32>
    %381 = arith.extui %380 : vector<8x128xi1> to vector<8x128xi32>
    %382 = arith.sitofp %381 : vector<8x128xi32> to vector<8x128xf32>
    %383 = arith.subf %377, %382 : vector<8x128xf32>
    %cst_67 = arith.constant -2.000000e-01 : f32
    %384 = vector.broadcast %cst_67 : f32 to vector<8x128xf32>
    %385 = arith.cmpf oge, %352, %384 : vector<8x128xf32>
    %386 = arith.extui %385 : vector<8x128xi1> to vector<8x128xi32>
    %387 = arith.sitofp %386 : vector<8x128xi32> to vector<8x128xf32>
    %388 = arith.subf %382, %387 : vector<8x128xf32>
    %cst_68 = arith.constant 2.000000e-01 : f32
    %389 = vector.broadcast %cst_68 : f32 to vector<8x128xf32>
    %390 = arith.cmpf oge, %352, %389 : vector<8x128xf32>
    %391 = arith.extui %390 : vector<8x128xi1> to vector<8x128xi32>
    %392 = arith.sitofp %391 : vector<8x128xi32> to vector<8x128xf32>
    %393 = arith.subf %387, %392 : vector<8x128xf32>
    %cst_69 = arith.constant 6.000000e-01 : f32
    %394 = vector.broadcast %cst_69 : f32 to vector<8x128xf32>
    %395 = arith.cmpf oge, %352, %394 : vector<8x128xf32>
    %396 = arith.extui %395 : vector<8x128xi1> to vector<8x128xi32>
    %397 = arith.sitofp %396 : vector<8x128xi32> to vector<8x128xf32>
    %398 = arith.subf %392, %397 : vector<8x128xf32>
    %cst_70 = arith.constant 1.000000e+00 : f32
    %399 = vector.broadcast %cst_70 : f32 to vector<8x128xf32>
    %400 = arith.cmpf oge, %352, %399 : vector<8x128xf32>
    %401 = arith.extui %400 : vector<8x128xi1> to vector<8x128xi32>
    %402 = arith.sitofp %401 : vector<8x128xi32> to vector<8x128xf32>
    %403 = arith.subf %397, %402 : vector<8x128xf32>
    %cst_71 = arith.constant 1.400000e+00 : f32
    %404 = vector.broadcast %cst_71 : f32 to vector<8x128xf32>
    %405 = arith.cmpf oge, %352, %404 : vector<8x128xf32>
    %406 = arith.extui %405 : vector<8x128xi1> to vector<8x128xi32>
    %407 = arith.sitofp %406 : vector<8x128xi32> to vector<8x128xf32>
    %408 = arith.subf %402, %407 : vector<8x128xf32>
    %cst_72 = arith.constant 1.800000e+00 : f32
    %409 = vector.broadcast %cst_72 : f32 to vector<8x128xf32>
    %410 = arith.cmpf oge, %352, %409 : vector<8x128xf32>
    %411 = arith.extui %410 : vector<8x128xi1> to vector<8x128xi32>
    %412 = arith.sitofp %411 : vector<8x128xi32> to vector<8x128xf32>
    %413 = arith.subf %407, %412 : vector<8x128xf32>
    %cst_73 = arith.constant 2.200000e+00 : f32
    %414 = vector.broadcast %cst_73 : f32 to vector<8x128xf32>
    %415 = arith.cmpf oge, %352, %414 : vector<8x128xf32>
    %416 = arith.extui %415 : vector<8x128xi1> to vector<8x128xi32>
    %417 = arith.sitofp %416 : vector<8x128xi32> to vector<8x128xf32>
    %418 = arith.subf %412, %417 : vector<8x128xf32>
    %cst_74 = arith.constant -2.200000e+00 : f32
    %419 = vector.broadcast %cst_74 : f32 to vector<8x128xf32>
    %420 = arith.subf %352, %419 : vector<8x128xf32>
    %cst_75 = arith.constant -1.800000e+00 : f32
    %421 = vector.broadcast %cst_75 : f32 to vector<8x128xf32>
    %422 = arith.subf %352, %421 : vector<8x128xf32>
    %cst_76 = arith.constant -1.400000e+00 : f32
    %423 = vector.broadcast %cst_76 : f32 to vector<8x128xf32>
    %424 = arith.subf %352, %423 : vector<8x128xf32>
    %cst_77 = arith.constant -1.000000e+00 : f32
    %425 = vector.broadcast %cst_77 : f32 to vector<8x128xf32>
    %426 = arith.subf %352, %425 : vector<8x128xf32>
    %cst_78 = arith.constant -6.000000e-01 : f32
    %427 = vector.broadcast %cst_78 : f32 to vector<8x128xf32>
    %428 = arith.subf %352, %427 : vector<8x128xf32>
    %cst_79 = arith.constant -2.000000e-01 : f32
    %429 = vector.broadcast %cst_79 : f32 to vector<8x128xf32>
    %430 = arith.subf %352, %429 : vector<8x128xf32>
    %cst_80 = arith.constant 2.000000e-01 : f32
    %431 = vector.broadcast %cst_80 : f32 to vector<8x128xf32>
    %432 = arith.subf %352, %431 : vector<8x128xf32>
    %cst_81 = arith.constant 6.000000e-01 : f32
    %433 = vector.broadcast %cst_81 : f32 to vector<8x128xf32>
    %434 = arith.subf %352, %433 : vector<8x128xf32>
    %cst_82 = arith.constant 1.000000e+00 : f32
    %435 = vector.broadcast %cst_82 : f32 to vector<8x128xf32>
    %436 = arith.subf %352, %435 : vector<8x128xf32>
    %cst_83 = arith.constant 1.400000e+00 : f32
    %437 = vector.broadcast %cst_83 : f32 to vector<8x128xf32>
    %438 = arith.subf %352, %437 : vector<8x128xf32>
    %cst_84 = arith.constant 1.800000e+00 : f32
    %439 = vector.broadcast %cst_84 : f32 to vector<8x128xf32>
    %440 = arith.subf %352, %439 : vector<8x128xf32>
    %cst_85 = arith.constant 2.200000e+00 : f32
    %441 = vector.broadcast %cst_85 : f32 to vector<8x128xf32>
    %442 = arith.subf %352, %441 : vector<8x128xf32>
    %443 = arith.mulf %420, %368 : vector<8x128xf32>
    %444 = arith.mulf %424, %373 : vector<8x128xf32>
    %445 = arith.subf %443, %444 : vector<8x128xf32>
    %446 = arith.mulf %422, %373 : vector<8x128xf32>
    %447 = arith.mulf %426, %378 : vector<8x128xf32>
    %448 = arith.subf %446, %447 : vector<8x128xf32>
    %449 = arith.mulf %424, %378 : vector<8x128xf32>
    %450 = arith.mulf %428, %383 : vector<8x128xf32>
    %451 = arith.subf %449, %450 : vector<8x128xf32>
    %452 = arith.mulf %426, %383 : vector<8x128xf32>
    %453 = arith.mulf %430, %388 : vector<8x128xf32>
    %454 = arith.subf %452, %453 : vector<8x128xf32>
    %455 = arith.mulf %428, %388 : vector<8x128xf32>
    %456 = arith.mulf %432, %393 : vector<8x128xf32>
    %457 = arith.subf %455, %456 : vector<8x128xf32>
    %458 = arith.mulf %430, %393 : vector<8x128xf32>
    %459 = arith.mulf %434, %398 : vector<8x128xf32>
    %460 = arith.subf %458, %459 : vector<8x128xf32>
    %461 = arith.mulf %432, %398 : vector<8x128xf32>
    %462 = arith.mulf %436, %403 : vector<8x128xf32>
    %463 = arith.subf %461, %462 : vector<8x128xf32>
    %464 = arith.mulf %434, %403 : vector<8x128xf32>
    %465 = arith.mulf %438, %408 : vector<8x128xf32>
    %466 = arith.subf %464, %465 : vector<8x128xf32>
    %467 = arith.mulf %436, %408 : vector<8x128xf32>
    %468 = arith.mulf %440, %413 : vector<8x128xf32>
    %469 = arith.subf %467, %468 : vector<8x128xf32>
    %470 = arith.mulf %438, %413 : vector<8x128xf32>
    %471 = arith.mulf %442, %418 : vector<8x128xf32>
    %472 = arith.subf %470, %471 : vector<8x128xf32>
    %473 = arith.mulf %420, %445 : vector<8x128xf32>
    %474 = arith.mulf %426, %448 : vector<8x128xf32>
    %475 = arith.subf %473, %474 : vector<8x128xf32>
    %476 = arith.mulf %422, %448 : vector<8x128xf32>
    %477 = arith.mulf %428, %451 : vector<8x128xf32>
    %478 = arith.subf %476, %477 : vector<8x128xf32>
    %479 = arith.mulf %424, %451 : vector<8x128xf32>
    %480 = arith.mulf %430, %454 : vector<8x128xf32>
    %481 = arith.subf %479, %480 : vector<8x128xf32>
    %482 = arith.mulf %426, %454 : vector<8x128xf32>
    %483 = arith.mulf %432, %457 : vector<8x128xf32>
    %484 = arith.subf %482, %483 : vector<8x128xf32>
    %485 = arith.mulf %428, %457 : vector<8x128xf32>
    %486 = arith.mulf %434, %460 : vector<8x128xf32>
    %487 = arith.subf %485, %486 : vector<8x128xf32>
    %488 = arith.mulf %430, %460 : vector<8x128xf32>
    %489 = arith.mulf %436, %463 : vector<8x128xf32>
    %490 = arith.subf %488, %489 : vector<8x128xf32>
    %491 = arith.mulf %432, %463 : vector<8x128xf32>
    %492 = arith.mulf %438, %466 : vector<8x128xf32>
    %493 = arith.subf %491, %492 : vector<8x128xf32>
    %494 = arith.mulf %434, %466 : vector<8x128xf32>
    %495 = arith.mulf %440, %469 : vector<8x128xf32>
    %496 = arith.subf %494, %495 : vector<8x128xf32>
    %497 = arith.mulf %436, %469 : vector<8x128xf32>
    %498 = arith.mulf %442, %472 : vector<8x128xf32>
    %499 = arith.subf %497, %498 : vector<8x128xf32>
    %500 = arith.mulf %420, %475 : vector<8x128xf32>
    %501 = arith.mulf %428, %478 : vector<8x128xf32>
    %502 = arith.subf %500, %501 : vector<8x128xf32>
    %503 = arith.mulf %422, %478 : vector<8x128xf32>
    %504 = arith.mulf %430, %481 : vector<8x128xf32>
    %505 = arith.subf %503, %504 : vector<8x128xf32>
    %506 = arith.mulf %424, %481 : vector<8x128xf32>
    %507 = arith.mulf %432, %484 : vector<8x128xf32>
    %508 = arith.subf %506, %507 : vector<8x128xf32>
    %509 = arith.mulf %426, %484 : vector<8x128xf32>
    %510 = arith.mulf %434, %487 : vector<8x128xf32>
    %511 = arith.subf %509, %510 : vector<8x128xf32>
    %512 = arith.mulf %428, %487 : vector<8x128xf32>
    %513 = arith.mulf %436, %490 : vector<8x128xf32>
    %514 = arith.subf %512, %513 : vector<8x128xf32>
    %515 = arith.mulf %430, %490 : vector<8x128xf32>
    %516 = arith.mulf %438, %493 : vector<8x128xf32>
    %517 = arith.subf %515, %516 : vector<8x128xf32>
    %518 = arith.mulf %432, %493 : vector<8x128xf32>
    %519 = arith.mulf %440, %496 : vector<8x128xf32>
    %520 = arith.subf %518, %519 : vector<8x128xf32>
    %521 = arith.mulf %434, %496 : vector<8x128xf32>
    %522 = arith.mulf %442, %499 : vector<8x128xf32>
    %523 = arith.subf %521, %522 : vector<8x128xf32>
    %524 = tpu.concatenate %359, %502, %505, %508, %511, %514, %517, %520, %523 in 0 : vector<8x128xf32>, vector<8x128xf32>, vector<8x128xf32>, vector<8x128xf32>, vector<8x128xf32>, vector<8x128xf32>, vector<8x128xf32>, vector<8x128xf32>, vector<8x128xf32> -> vector<72x128xf32>
    %c0_86 = arith.constant 0 : index
    %c1 = arith.constant 1 : index
    %c0_87 = arith.constant 0 : index
    %525 = vector.load %arg3[%c0_86, %c1, %c0_87] : memref<8x4x72xf32, #tpu.memory_space<vmem>>, vector<8x1x72xf32>
    %526 = vector.shape_cast %525 : vector<8x1x72xf32> to vector<8x72xf32>
    %cst_88 = arith.constant dense<0.000000e+00> : vector<8x128xf32>
    %527 = tpu.matmul %526, %524, %cst_88 {dimension_numbers = #tpu.dot_dimension_numbers<[1], [0], [0], [1], [0, 0, 1, 1], [], []>} : vector<8x72xf32>, vector<72x128xf32>, vector<8x128xf32> -> vector<8x128xf32>
    %528 = arith.addf %351, %527 : vector<8x128xf32>
    %529 = vector.extract_strided_slice %175 {offsets = [16, 0], sizes = [8, 128], strides = [1, 1]} : vector<32x128xf32> to vector<8x128xf32>
    %cst_89 = arith.constant 0.000000e+00 : f32
    %530 = vector.broadcast %cst_89 : f32 to vector<8x128xf32>
    %531 = arith.subf %530, %529 : vector<8x128xf32>
    %532 = math.exp %531 : vector<8x128xf32>
    %cst_90 = arith.constant 1.000000e+00 : f32
    %533 = vector.broadcast %cst_90 : f32 to vector<8x128xf32>
    %534 = arith.addf %533, %532 : vector<8x128xf32>
    %535 = tpu.reciprocal %534 : vector<8x128xf32> -> vector<8x128xf32>
    %536 = arith.mulf %529, %535 : vector<8x128xf32>
    %cst_91 = arith.constant -2.200000e+00 : f32
    %537 = vector.broadcast %cst_91 : f32 to vector<8x128xf32>
    %538 = arith.cmpf oge, %529, %537 : vector<8x128xf32>
    %539 = arith.extui %538 : vector<8x128xi1> to vector<8x128xi32>
    %540 = arith.sitofp %539 : vector<8x128xi32> to vector<8x128xf32>
    %cst_92 = arith.constant -1.800000e+00 : f32
    %541 = vector.broadcast %cst_92 : f32 to vector<8x128xf32>
    %542 = arith.cmpf oge, %529, %541 : vector<8x128xf32>
    %543 = arith.extui %542 : vector<8x128xi1> to vector<8x128xi32>
    %544 = arith.sitofp %543 : vector<8x128xi32> to vector<8x128xf32>
    %545 = arith.subf %540, %544 : vector<8x128xf32>
    %cst_93 = arith.constant -1.400000e+00 : f32
    %546 = vector.broadcast %cst_93 : f32 to vector<8x128xf32>
    %547 = arith.cmpf oge, %529, %546 : vector<8x128xf32>
    %548 = arith.extui %547 : vector<8x128xi1> to vector<8x128xi32>
    %549 = arith.sitofp %548 : vector<8x128xi32> to vector<8x128xf32>
    %550 = arith.subf %544, %549 : vector<8x128xf32>
    %cst_94 = arith.constant -1.000000e+00 : f32
    %551 = vector.broadcast %cst_94 : f32 to vector<8x128xf32>
    %552 = arith.cmpf oge, %529, %551 : vector<8x128xf32>
    %553 = arith.extui %552 : vector<8x128xi1> to vector<8x128xi32>
    %554 = arith.sitofp %553 : vector<8x128xi32> to vector<8x128xf32>
    %555 = arith.subf %549, %554 : vector<8x128xf32>
    %cst_95 = arith.constant -6.000000e-01 : f32
    %556 = vector.broadcast %cst_95 : f32 to vector<8x128xf32>
    %557 = arith.cmpf oge, %529, %556 : vector<8x128xf32>
    %558 = arith.extui %557 : vector<8x128xi1> to vector<8x128xi32>
    %559 = arith.sitofp %558 : vector<8x128xi32> to vector<8x128xf32>
    %560 = arith.subf %554, %559 : vector<8x128xf32>
    %cst_96 = arith.constant -2.000000e-01 : f32
    %561 = vector.broadcast %cst_96 : f32 to vector<8x128xf32>
    %562 = arith.cmpf oge, %529, %561 : vector<8x128xf32>
    %563 = arith.extui %562 : vector<8x128xi1> to vector<8x128xi32>
    %564 = arith.sitofp %563 : vector<8x128xi32> to vector<8x128xf32>
    %565 = arith.subf %559, %564 : vector<8x128xf32>
    %cst_97 = arith.constant 2.000000e-01 : f32
    %566 = vector.broadcast %cst_97 : f32 to vector<8x128xf32>
    %567 = arith.cmpf oge, %529, %566 : vector<8x128xf32>
    %568 = arith.extui %567 : vector<8x128xi1> to vector<8x128xi32>
    %569 = arith.sitofp %568 : vector<8x128xi32> to vector<8x128xf32>
    %570 = arith.subf %564, %569 : vector<8x128xf32>
    %cst_98 = arith.constant 6.000000e-01 : f32
    %571 = vector.broadcast %cst_98 : f32 to vector<8x128xf32>
    %572 = arith.cmpf oge, %529, %571 : vector<8x128xf32>
    %573 = arith.extui %572 : vector<8x128xi1> to vector<8x128xi32>
    %574 = arith.sitofp %573 : vector<8x128xi32> to vector<8x128xf32>
    %575 = arith.subf %569, %574 : vector<8x128xf32>
    %cst_99 = arith.constant 1.000000e+00 : f32
    %576 = vector.broadcast %cst_99 : f32 to vector<8x128xf32>
    %577 = arith.cmpf oge, %529, %576 : vector<8x128xf32>
    %578 = arith.extui %577 : vector<8x128xi1> to vector<8x128xi32>
    %579 = arith.sitofp %578 : vector<8x128xi32> to vector<8x128xf32>
    %580 = arith.subf %574, %579 : vector<8x128xf32>
    %cst_100 = arith.constant 1.400000e+00 : f32
    %581 = vector.broadcast %cst_100 : f32 to vector<8x128xf32>
    %582 = arith.cmpf oge, %529, %581 : vector<8x128xf32>
    %583 = arith.extui %582 : vector<8x128xi1> to vector<8x128xi32>
    %584 = arith.sitofp %583 : vector<8x128xi32> to vector<8x128xf32>
    %585 = arith.subf %579, %584 : vector<8x128xf32>
    %cst_101 = arith.constant 1.800000e+00 : f32
    %586 = vector.broadcast %cst_101 : f32 to vector<8x128xf32>
    %587 = arith.cmpf oge, %529, %586 : vector<8x128xf32>
    %588 = arith.extui %587 : vector<8x128xi1> to vector<8x128xi32>
    %589 = arith.sitofp %588 : vector<8x128xi32> to vector<8x128xf32>
    %590 = arith.subf %584, %589 : vector<8x128xf32>
    %cst_102 = arith.constant 2.200000e+00 : f32
    %591 = vector.broadcast %cst_102 : f32 to vector<8x128xf32>
    %592 = arith.cmpf oge, %529, %591 : vector<8x128xf32>
    %593 = arith.extui %592 : vector<8x128xi1> to vector<8x128xi32>
    %594 = arith.sitofp %593 : vector<8x128xi32> to vector<8x128xf32>
    %595 = arith.subf %589, %594 : vector<8x128xf32>
    %cst_103 = arith.constant -2.200000e+00 : f32
    %596 = vector.broadcast %cst_103 : f32 to vector<8x128xf32>
    %597 = arith.subf %529, %596 : vector<8x128xf32>
    %cst_104 = arith.constant -1.800000e+00 : f32
    %598 = vector.broadcast %cst_104 : f32 to vector<8x128xf32>
    %599 = arith.subf %529, %598 : vector<8x128xf32>
    %cst_105 = arith.constant -1.400000e+00 : f32
    %600 = vector.broadcast %cst_105 : f32 to vector<8x128xf32>
    %601 = arith.subf %529, %600 : vector<8x128xf32>
    %cst_106 = arith.constant -1.000000e+00 : f32
    %602 = vector.broadcast %cst_106 : f32 to vector<8x128xf32>
    %603 = arith.subf %529, %602 : vector<8x128xf32>
    %cst_107 = arith.constant -6.000000e-01 : f32
    %604 = vector.broadcast %cst_107 : f32 to vector<8x128xf32>
    %605 = arith.subf %529, %604 : vector<8x128xf32>
    %cst_108 = arith.constant -2.000000e-01 : f32
    %606 = vector.broadcast %cst_108 : f32 to vector<8x128xf32>
    %607 = arith.subf %529, %606 : vector<8x128xf32>
    %cst_109 = arith.constant 2.000000e-01 : f32
    %608 = vector.broadcast %cst_109 : f32 to vector<8x128xf32>
    %609 = arith.subf %529, %608 : vector<8x128xf32>
    %cst_110 = arith.constant 6.000000e-01 : f32
    %610 = vector.broadcast %cst_110 : f32 to vector<8x128xf32>
    %611 = arith.subf %529, %610 : vector<8x128xf32>
    %cst_111 = arith.constant 1.000000e+00 : f32
    %612 = vector.broadcast %cst_111 : f32 to vector<8x128xf32>
    %613 = arith.subf %529, %612 : vector<8x128xf32>
    %cst_112 = arith.constant 1.400000e+00 : f32
    %614 = vector.broadcast %cst_112 : f32 to vector<8x128xf32>
    %615 = arith.subf %529, %614 : vector<8x128xf32>
    %cst_113 = arith.constant 1.800000e+00 : f32
    %616 = vector.broadcast %cst_113 : f32 to vector<8x128xf32>
    %617 = arith.subf %529, %616 : vector<8x128xf32>
    %cst_114 = arith.constant 2.200000e+00 : f32
    %618 = vector.broadcast %cst_114 : f32 to vector<8x128xf32>
    %619 = arith.subf %529, %618 : vector<8x128xf32>
    %620 = arith.mulf %597, %545 : vector<8x128xf32>
    %621 = arith.mulf %601, %550 : vector<8x128xf32>
    %622 = arith.subf %620, %621 : vector<8x128xf32>
    %623 = arith.mulf %599, %550 : vector<8x128xf32>
    %624 = arith.mulf %603, %555 : vector<8x128xf32>
    %625 = arith.subf %623, %624 : vector<8x128xf32>
    %626 = arith.mulf %601, %555 : vector<8x128xf32>
    %627 = arith.mulf %605, %560 : vector<8x128xf32>
    %628 = arith.subf %626, %627 : vector<8x128xf32>
    %629 = arith.mulf %603, %560 : vector<8x128xf32>
    %630 = arith.mulf %607, %565 : vector<8x128xf32>
    %631 = arith.subf %629, %630 : vector<8x128xf32>
    %632 = arith.mulf %605, %565 : vector<8x128xf32>
    %633 = arith.mulf %609, %570 : vector<8x128xf32>
    %634 = arith.subf %632, %633 : vector<8x128xf32>
    %635 = arith.mulf %607, %570 : vector<8x128xf32>
    %636 = arith.mulf %611, %575 : vector<8x128xf32>
    %637 = arith.subf %635, %636 : vector<8x128xf32>
    %638 = arith.mulf %609, %575 : vector<8x128xf32>
    %639 = arith.mulf %613, %580 : vector<8x128xf32>
    %640 = arith.subf %638, %639 : vector<8x128xf32>
    %641 = arith.mulf %611, %580 : vector<8x128xf32>
    %642 = arith.mulf %615, %585 : vector<8x128xf32>
    %643 = arith.subf %641, %642 : vector<8x128xf32>
    %644 = arith.mulf %613, %585 : vector<8x128xf32>
    %645 = arith.mulf %617, %590 : vector<8x128xf32>
    %646 = arith.subf %644, %645 : vector<8x128xf32>
    %647 = arith.mulf %615, %590 : vector<8x128xf32>
    %648 = arith.mulf %619, %595 : vector<8x128xf32>
    %649 = arith.subf %647, %648 : vector<8x128xf32>
    %650 = arith.mulf %597, %622 : vector<8x128xf32>
    %651 = arith.mulf %603, %625 : vector<8x128xf32>
    %652 = arith.subf %650, %651 : vector<8x128xf32>
    %653 = arith.mulf %599, %625 : vector<8x128xf32>
    %654 = arith.mulf %605, %628 : vector<8x128xf32>
    %655 = arith.subf %653, %654 : vector<8x128xf32>
    %656 = arith.mulf %601, %628 : vector<8x128xf32>
    %657 = arith.mulf %607, %631 : vector<8x128xf32>
    %658 = arith.subf %656, %657 : vector<8x128xf32>
    %659 = arith.mulf %603, %631 : vector<8x128xf32>
    %660 = arith.mulf %609, %634 : vector<8x128xf32>
    %661 = arith.subf %659, %660 : vector<8x128xf32>
    %662 = arith.mulf %605, %634 : vector<8x128xf32>
    %663 = arith.mulf %611, %637 : vector<8x128xf32>
    %664 = arith.subf %662, %663 : vector<8x128xf32>
    %665 = arith.mulf %607, %637 : vector<8x128xf32>
    %666 = arith.mulf %613, %640 : vector<8x128xf32>
    %667 = arith.subf %665, %666 : vector<8x128xf32>
    %668 = arith.mulf %609, %640 : vector<8x128xf32>
    %669 = arith.mulf %615, %643 : vector<8x128xf32>
    %670 = arith.subf %668, %669 : vector<8x128xf32>
    %671 = arith.mulf %611, %643 : vector<8x128xf32>
    %672 = arith.mulf %617, %646 : vector<8x128xf32>
    %673 = arith.subf %671, %672 : vector<8x128xf32>
    %674 = arith.mulf %613, %646 : vector<8x128xf32>
    %675 = arith.mulf %619, %649 : vector<8x128xf32>
    %676 = arith.subf %674, %675 : vector<8x128xf32>
    %677 = arith.mulf %597, %652 : vector<8x128xf32>
    %678 = arith.mulf %605, %655 : vector<8x128xf32>
    %679 = arith.subf %677, %678 : vector<8x128xf32>
    %680 = arith.mulf %599, %655 : vector<8x128xf32>
    %681 = arith.mulf %607, %658 : vector<8x128xf32>
    %682 = arith.subf %680, %681 : vector<8x128xf32>
    %683 = arith.mulf %601, %658 : vector<8x128xf32>
    %684 = arith.mulf %609, %661 : vector<8x128xf32>
    %685 = arith.subf %683, %684 : vector<8x128xf32>
    %686 = arith.mulf %603, %661 : vector<8x128xf32>
    %687 = arith.mulf %611, %664 : vector<8x128xf32>
    %688 = arith.subf %686, %687 : vector<8x128xf32>
    %689 = arith.mulf %605, %664 : vector<8x128xf32>
    %690 = arith.mulf %613, %667 : vector<8x128xf32>
    %691 = arith.subf %689, %690 : vector<8x128xf32>
    %692 = arith.mulf %607, %667 : vector<8x128xf32>
    %693 = arith.mulf %615, %670 : vector<8x128xf32>
    %694 = arith.subf %692, %693 : vector<8x128xf32>
    %695 = arith.mulf %609, %670 : vector<8x128xf32>
    %696 = arith.mulf %617, %673 : vector<8x128xf32>
    %697 = arith.subf %695, %696 : vector<8x128xf32>
    %698 = arith.mulf %611, %673 : vector<8x128xf32>
    %699 = arith.mulf %619, %676 : vector<8x128xf32>
    %700 = arith.subf %698, %699 : vector<8x128xf32>
    %701 = tpu.concatenate %536, %679, %682, %685, %688, %691, %694, %697, %700 in 0 : vector<8x128xf32>, vector<8x128xf32>, vector<8x128xf32>, vector<8x128xf32>, vector<8x128xf32>, vector<8x128xf32>, vector<8x128xf32>, vector<8x128xf32>, vector<8x128xf32> -> vector<72x128xf32>
    %c0_115 = arith.constant 0 : index
    %c2 = arith.constant 2 : index
    %c0_116 = arith.constant 0 : index
    %702 = vector.load %arg3[%c0_115, %c2, %c0_116] : memref<8x4x72xf32, #tpu.memory_space<vmem>>, vector<8x1x72xf32>
    %703 = vector.shape_cast %702 : vector<8x1x72xf32> to vector<8x72xf32>
    %cst_117 = arith.constant dense<0.000000e+00> : vector<8x128xf32>
    %704 = tpu.matmul %703, %701, %cst_117 {dimension_numbers = #tpu.dot_dimension_numbers<[1], [0], [0], [1], [0, 0, 1, 1], [], []>} : vector<8x72xf32>, vector<72x128xf32>, vector<8x128xf32> -> vector<8x128xf32>
    %705 = arith.addf %528, %704 : vector<8x128xf32>
    %706 = vector.extract_strided_slice %175 {offsets = [24, 0], sizes = [8, 128], strides = [1, 1]} : vector<32x128xf32> to vector<8x128xf32>
    %cst_118 = arith.constant 0.000000e+00 : f32
    %707 = vector.broadcast %cst_118 : f32 to vector<8x128xf32>
    %708 = arith.subf %707, %706 : vector<8x128xf32>
    %709 = math.exp %708 : vector<8x128xf32>
    %cst_119 = arith.constant 1.000000e+00 : f32
    %710 = vector.broadcast %cst_119 : f32 to vector<8x128xf32>
    %711 = arith.addf %710, %709 : vector<8x128xf32>
    %712 = tpu.reciprocal %711 : vector<8x128xf32> -> vector<8x128xf32>
    %713 = arith.mulf %706, %712 : vector<8x128xf32>
    %cst_120 = arith.constant -2.200000e+00 : f32
    %714 = vector.broadcast %cst_120 : f32 to vector<8x128xf32>
    %715 = arith.cmpf oge, %706, %714 : vector<8x128xf32>
    %716 = arith.extui %715 : vector<8x128xi1> to vector<8x128xi32>
    %717 = arith.sitofp %716 : vector<8x128xi32> to vector<8x128xf32>
    %cst_121 = arith.constant -1.800000e+00 : f32
    %718 = vector.broadcast %cst_121 : f32 to vector<8x128xf32>
    %719 = arith.cmpf oge, %706, %718 : vector<8x128xf32>
    %720 = arith.extui %719 : vector<8x128xi1> to vector<8x128xi32>
    %721 = arith.sitofp %720 : vector<8x128xi32> to vector<8x128xf32>
    %722 = arith.subf %717, %721 : vector<8x128xf32>
    %cst_122 = arith.constant -1.400000e+00 : f32
    %723 = vector.broadcast %cst_122 : f32 to vector<8x128xf32>
    %724 = arith.cmpf oge, %706, %723 : vector<8x128xf32>
    %725 = arith.extui %724 : vector<8x128xi1> to vector<8x128xi32>
    %726 = arith.sitofp %725 : vector<8x128xi32> to vector<8x128xf32>
    %727 = arith.subf %721, %726 : vector<8x128xf32>
    %cst_123 = arith.constant -1.000000e+00 : f32
    %728 = vector.broadcast %cst_123 : f32 to vector<8x128xf32>
    %729 = arith.cmpf oge, %706, %728 : vector<8x128xf32>
    %730 = arith.extui %729 : vector<8x128xi1> to vector<8x128xi32>
    %731 = arith.sitofp %730 : vector<8x128xi32> to vector<8x128xf32>
    %732 = arith.subf %726, %731 : vector<8x128xf32>
    %cst_124 = arith.constant -6.000000e-01 : f32
    %733 = vector.broadcast %cst_124 : f32 to vector<8x128xf32>
    %734 = arith.cmpf oge, %706, %733 : vector<8x128xf32>
    %735 = arith.extui %734 : vector<8x128xi1> to vector<8x128xi32>
    %736 = arith.sitofp %735 : vector<8x128xi32> to vector<8x128xf32>
    %737 = arith.subf %731, %736 : vector<8x128xf32>
    %cst_125 = arith.constant -2.000000e-01 : f32
    %738 = vector.broadcast %cst_125 : f32 to vector<8x128xf32>
    %739 = arith.cmpf oge, %706, %738 : vector<8x128xf32>
    %740 = arith.extui %739 : vector<8x128xi1> to vector<8x128xi32>
    %741 = arith.sitofp %740 : vector<8x128xi32> to vector<8x128xf32>
    %742 = arith.subf %736, %741 : vector<8x128xf32>
    %cst_126 = arith.constant 2.000000e-01 : f32
    %743 = vector.broadcast %cst_126 : f32 to vector<8x128xf32>
    %744 = arith.cmpf oge, %706, %743 : vector<8x128xf32>
    %745 = arith.extui %744 : vector<8x128xi1> to vector<8x128xi32>
    %746 = arith.sitofp %745 : vector<8x128xi32> to vector<8x128xf32>
    %747 = arith.subf %741, %746 : vector<8x128xf32>
    %cst_127 = arith.constant 6.000000e-01 : f32
    %748 = vector.broadcast %cst_127 : f32 to vector<8x128xf32>
    %749 = arith.cmpf oge, %706, %748 : vector<8x128xf32>
    %750 = arith.extui %749 : vector<8x128xi1> to vector<8x128xi32>
    %751 = arith.sitofp %750 : vector<8x128xi32> to vector<8x128xf32>
    %752 = arith.subf %746, %751 : vector<8x128xf32>
    %cst_128 = arith.constant 1.000000e+00 : f32
    %753 = vector.broadcast %cst_128 : f32 to vector<8x128xf32>
    %754 = arith.cmpf oge, %706, %753 : vector<8x128xf32>
    %755 = arith.extui %754 : vector<8x128xi1> to vector<8x128xi32>
    %756 = arith.sitofp %755 : vector<8x128xi32> to vector<8x128xf32>
    %757 = arith.subf %751, %756 : vector<8x128xf32>
    %cst_129 = arith.constant 1.400000e+00 : f32
    %758 = vector.broadcast %cst_129 : f32 to vector<8x128xf32>
    %759 = arith.cmpf oge, %706, %758 : vector<8x128xf32>
    %760 = arith.extui %759 : vector<8x128xi1> to vector<8x128xi32>
    %761 = arith.sitofp %760 : vector<8x128xi32> to vector<8x128xf32>
    %762 = arith.subf %756, %761 : vector<8x128xf32>
    %cst_130 = arith.constant 1.800000e+00 : f32
    %763 = vector.broadcast %cst_130 : f32 to vector<8x128xf32>
    %764 = arith.cmpf oge, %706, %763 : vector<8x128xf32>
    %765 = arith.extui %764 : vector<8x128xi1> to vector<8x128xi32>
    %766 = arith.sitofp %765 : vector<8x128xi32> to vector<8x128xf32>
    %767 = arith.subf %761, %766 : vector<8x128xf32>
    %cst_131 = arith.constant 2.200000e+00 : f32
    %768 = vector.broadcast %cst_131 : f32 to vector<8x128xf32>
    %769 = arith.cmpf oge, %706, %768 : vector<8x128xf32>
    %770 = arith.extui %769 : vector<8x128xi1> to vector<8x128xi32>
    %771 = arith.sitofp %770 : vector<8x128xi32> to vector<8x128xf32>
    %772 = arith.subf %766, %771 : vector<8x128xf32>
    %cst_132 = arith.constant -2.200000e+00 : f32
    %773 = vector.broadcast %cst_132 : f32 to vector<8x128xf32>
    %774 = arith.subf %706, %773 : vector<8x128xf32>
    %cst_133 = arith.constant -1.800000e+00 : f32
    %775 = vector.broadcast %cst_133 : f32 to vector<8x128xf32>
    %776 = arith.subf %706, %775 : vector<8x128xf32>
    %cst_134 = arith.constant -1.400000e+00 : f32
    %777 = vector.broadcast %cst_134 : f32 to vector<8x128xf32>
    %778 = arith.subf %706, %777 : vector<8x128xf32>
    %cst_135 = arith.constant -1.000000e+00 : f32
    %779 = vector.broadcast %cst_135 : f32 to vector<8x128xf32>
    %780 = arith.subf %706, %779 : vector<8x128xf32>
    %cst_136 = arith.constant -6.000000e-01 : f32
    %781 = vector.broadcast %cst_136 : f32 to vector<8x128xf32>
    %782 = arith.subf %706, %781 : vector<8x128xf32>
    %cst_137 = arith.constant -2.000000e-01 : f32
    %783 = vector.broadcast %cst_137 : f32 to vector<8x128xf32>
    %784 = arith.subf %706, %783 : vector<8x128xf32>
    %cst_138 = arith.constant 2.000000e-01 : f32
    %785 = vector.broadcast %cst_138 : f32 to vector<8x128xf32>
    %786 = arith.subf %706, %785 : vector<8x128xf32>
    %cst_139 = arith.constant 6.000000e-01 : f32
    %787 = vector.broadcast %cst_139 : f32 to vector<8x128xf32>
    %788 = arith.subf %706, %787 : vector<8x128xf32>
    %cst_140 = arith.constant 1.000000e+00 : f32
    %789 = vector.broadcast %cst_140 : f32 to vector<8x128xf32>
    %790 = arith.subf %706, %789 : vector<8x128xf32>
    %cst_141 = arith.constant 1.400000e+00 : f32
    %791 = vector.broadcast %cst_141 : f32 to vector<8x128xf32>
    %792 = arith.subf %706, %791 : vector<8x128xf32>
    %cst_142 = arith.constant 1.800000e+00 : f32
    %793 = vector.broadcast %cst_142 : f32 to vector<8x128xf32>
    %794 = arith.subf %706, %793 : vector<8x128xf32>
    %cst_143 = arith.constant 2.200000e+00 : f32
    %795 = vector.broadcast %cst_143 : f32 to vector<8x128xf32>
    %796 = arith.subf %706, %795 : vector<8x128xf32>
    %797 = arith.mulf %774, %722 : vector<8x128xf32>
    %798 = arith.mulf %778, %727 : vector<8x128xf32>
    %799 = arith.subf %797, %798 : vector<8x128xf32>
    %800 = arith.mulf %776, %727 : vector<8x128xf32>
    %801 = arith.mulf %780, %732 : vector<8x128xf32>
    %802 = arith.subf %800, %801 : vector<8x128xf32>
    %803 = arith.mulf %778, %732 : vector<8x128xf32>
    %804 = arith.mulf %782, %737 : vector<8x128xf32>
    %805 = arith.subf %803, %804 : vector<8x128xf32>
    %806 = arith.mulf %780, %737 : vector<8x128xf32>
    %807 = arith.mulf %784, %742 : vector<8x128xf32>
    %808 = arith.subf %806, %807 : vector<8x128xf32>
    %809 = arith.mulf %782, %742 : vector<8x128xf32>
    %810 = arith.mulf %786, %747 : vector<8x128xf32>
    %811 = arith.subf %809, %810 : vector<8x128xf32>
    %812 = arith.mulf %784, %747 : vector<8x128xf32>
    %813 = arith.mulf %788, %752 : vector<8x128xf32>
    %814 = arith.subf %812, %813 : vector<8x128xf32>
    %815 = arith.mulf %786, %752 : vector<8x128xf32>
    %816 = arith.mulf %790, %757 : vector<8x128xf32>
    %817 = arith.subf %815, %816 : vector<8x128xf32>
    %818 = arith.mulf %788, %757 : vector<8x128xf32>
    %819 = arith.mulf %792, %762 : vector<8x128xf32>
    %820 = arith.subf %818, %819 : vector<8x128xf32>
    %821 = arith.mulf %790, %762 : vector<8x128xf32>
    %822 = arith.mulf %794, %767 : vector<8x128xf32>
    %823 = arith.subf %821, %822 : vector<8x128xf32>
    %824 = arith.mulf %792, %767 : vector<8x128xf32>
    %825 = arith.mulf %796, %772 : vector<8x128xf32>
    %826 = arith.subf %824, %825 : vector<8x128xf32>
    %827 = arith.mulf %774, %799 : vector<8x128xf32>
    %828 = arith.mulf %780, %802 : vector<8x128xf32>
    %829 = arith.subf %827, %828 : vector<8x128xf32>
    %830 = arith.mulf %776, %802 : vector<8x128xf32>
    %831 = arith.mulf %782, %805 : vector<8x128xf32>
    %832 = arith.subf %830, %831 : vector<8x128xf32>
    %833 = arith.mulf %778, %805 : vector<8x128xf32>
    %834 = arith.mulf %784, %808 : vector<8x128xf32>
    %835 = arith.subf %833, %834 : vector<8x128xf32>
    %836 = arith.mulf %780, %808 : vector<8x128xf32>
    %837 = arith.mulf %786, %811 : vector<8x128xf32>
    %838 = arith.subf %836, %837 : vector<8x128xf32>
    %839 = arith.mulf %782, %811 : vector<8x128xf32>
    %840 = arith.mulf %788, %814 : vector<8x128xf32>
    %841 = arith.subf %839, %840 : vector<8x128xf32>
    %842 = arith.mulf %784, %814 : vector<8x128xf32>
    %843 = arith.mulf %790, %817 : vector<8x128xf32>
    %844 = arith.subf %842, %843 : vector<8x128xf32>
    %845 = arith.mulf %786, %817 : vector<8x128xf32>
    %846 = arith.mulf %792, %820 : vector<8x128xf32>
    %847 = arith.subf %845, %846 : vector<8x128xf32>
    %848 = arith.mulf %788, %820 : vector<8x128xf32>
    %849 = arith.mulf %794, %823 : vector<8x128xf32>
    %850 = arith.subf %848, %849 : vector<8x128xf32>
    %851 = arith.mulf %790, %823 : vector<8x128xf32>
    %852 = arith.mulf %796, %826 : vector<8x128xf32>
    %853 = arith.subf %851, %852 : vector<8x128xf32>
    %854 = arith.mulf %774, %829 : vector<8x128xf32>
    %855 = arith.mulf %782, %832 : vector<8x128xf32>
    %856 = arith.subf %854, %855 : vector<8x128xf32>
    %857 = arith.mulf %776, %832 : vector<8x128xf32>
    %858 = arith.mulf %784, %835 : vector<8x128xf32>
    %859 = arith.subf %857, %858 : vector<8x128xf32>
    %860 = arith.mulf %778, %835 : vector<8x128xf32>
    %861 = arith.mulf %786, %838 : vector<8x128xf32>
    %862 = arith.subf %860, %861 : vector<8x128xf32>
    %863 = arith.mulf %780, %838 : vector<8x128xf32>
    %864 = arith.mulf %788, %841 : vector<8x128xf32>
    %865 = arith.subf %863, %864 : vector<8x128xf32>
    %866 = arith.mulf %782, %841 : vector<8x128xf32>
    %867 = arith.mulf %790, %844 : vector<8x128xf32>
    %868 = arith.subf %866, %867 : vector<8x128xf32>
    %869 = arith.mulf %784, %844 : vector<8x128xf32>
    %870 = arith.mulf %792, %847 : vector<8x128xf32>
    %871 = arith.subf %869, %870 : vector<8x128xf32>
    %872 = arith.mulf %786, %847 : vector<8x128xf32>
    %873 = arith.mulf %794, %850 : vector<8x128xf32>
    %874 = arith.subf %872, %873 : vector<8x128xf32>
    %875 = arith.mulf %788, %850 : vector<8x128xf32>
    %876 = arith.mulf %796, %853 : vector<8x128xf32>
    %877 = arith.subf %875, %876 : vector<8x128xf32>
    %878 = tpu.concatenate %713, %856, %859, %862, %865, %868, %871, %874, %877 in 0 : vector<8x128xf32>, vector<8x128xf32>, vector<8x128xf32>, vector<8x128xf32>, vector<8x128xf32>, vector<8x128xf32>, vector<8x128xf32>, vector<8x128xf32>, vector<8x128xf32> -> vector<72x128xf32>
    %c0_144 = arith.constant 0 : index
    %c3 = arith.constant 3 : index
    %c0_145 = arith.constant 0 : index
    %879 = vector.load %arg3[%c0_144, %c3, %c0_145] : memref<8x4x72xf32, #tpu.memory_space<vmem>>, vector<8x1x72xf32>
    %880 = vector.shape_cast %879 : vector<8x1x72xf32> to vector<8x72xf32>
    %cst_146 = arith.constant dense<0.000000e+00> : vector<8x128xf32>
    %881 = tpu.matmul %880, %878, %cst_146 {dimension_numbers = #tpu.dot_dimension_numbers<[1], [0], [0], [1], [0, 0, 1, 1], [], []>} : vector<8x72xf32>, vector<72x128xf32>, vector<8x128xf32> -> vector<8x128xf32>
    %882 = arith.addf %705, %881 : vector<8x128xf32>
    %c0_147 = arith.constant 0 : index
    %c0_148 = arith.constant 0 : index
    %883 = vector.load %arg4[%c0_147, %c0_148] : memref<8x128xf32, #tpu.memory_space<vmem>>, vector<8x128xf32>
    tpu.vector_store %arg4[%c0_147, %c0_148], %882 {strides = array<i32>} : memref<8x128xf32, #tpu.memory_space<vmem>>, vector<8x128xf32>,
    return
  }
  func.func @transform_0(%arg0: i32) -> (i32, i32) {
    %c0_i32 = arith.constant 0 : i32
    %c0_i32_0 = arith.constant 0 : i32
    return %c0_i32, %arg0 : i32, i32
  }
  func.func @transform_1(%arg0: i32) -> (i32, i32, i32) {
    %c0_i32 = arith.constant 0 : i32
    %c0_i32_0 = arith.constant 0 : i32
    %c0_i32_1 = arith.constant 0 : i32
    %c0_i32_2 = arith.constant 0 : i32
    return %c0_i32, %c0_i32_0, %c0_i32_1 : i32, i32, i32
  }
  func.func @transform_2(%arg0: i32) -> (i32, i32, i32) {
    %c0_i32 = arith.constant 0 : i32
    %c0_i32_0 = arith.constant 0 : i32
    %c0_i32_1 = arith.constant 0 : i32
    %c0_i32_2 = arith.constant 0 : i32
    return %c0_i32, %c0_i32_0, %c0_i32_1 : i32, i32, i32
  }
  func.func @transform_3(%arg0: i32) -> (i32, i32) {
    %c0_i32 = arith.constant 0 : i32
    %c0_i32_0 = arith.constant 0 : i32
    return %c0_i32, %arg0 : i32, i32
  }
}

</mosaic_0001>

<bundles_post_ra>
// kernel: tpu_custom_call.1
= control target key start
LH: loop header
LB: loop body
LE: loop exit
PB: predicated region body
PF: predicated region fallthrough
CT: control target
= control target key end

     0   :  { %8 = vsyncpa [#allocation3], 0  ;;  %s2728_s0 = inlined_call_operand.hbm [shape: f32[8,128], index: 0, kind: input, shape index: {}]   ;;  %s2729_s1 = inlined_call_operand.hbm [shape: f32[32,1,72], index: 1, kind: input, shape index: {}]   ;;  %s2730_s2 = inlined_call_operand.hbm [shape: f32[8,4,72], index: 2, kind: input, shape index: {}]   ;;  %s2731_s3 = inlined_call_operand.hbm [shape: f32[8,128], index: 3, kind: output, shape index: {}]  }
   0x1   :  { %9 = vsyncpa [#allocation6], 0 }
   0x2   :  { %10 = vsyncpa [#allocation4], 0  ;;  %s2057_s12 = smov [#allocation5]   ;;  %s1963_s16 = scalar_lea.hbm %s2729_s1, 512 }
   0x3   :  { %s26_s13 = sshll.u32 %s2057_s12, 4  ;;  %p1964_p0 = scmp.ne.s32.totalorder %s2729_s1, %s1963_s16  ;;  %s27_s13 = int_to_ptr.vmem [resolvable:$true] %s26_s13 }
   0x4   :  { %p1967_p1 = scmp.lt.u32.totalorder %s1963_s16, %s2729_s1 }
   0x6   :  { %p1969_p2 = pnand %p1967_p1, %p1964_p0 }
   0x8   :  { %1972 = shalt.err (!%p1969_p2)
}
   0x9   :  { %s1973_s21 = scalar_lea.vmem %s27_s13, 512  ;;  %p1978_p4 = scmp.lt.s32.totalorder %s27_s13, %s27_s13 }
   0xa   :  { %p1974_p3 = scmp.ne.s32.totalorder %s27_s13, %s1973_s21  ;;  %p1979_p5 = scmp.lt.s32.totalorder %s1973_s21, %s1973_s21 }
   0xc   :  { %p1980_p6 = por %p1979_p5, %p1978_p4 }
   0xe   :  { %p1981_p7 = pnand %p1980_p6, %p1974_p3 }
  0x10   :  { %1984 = shalt.err (!%p1981_p7)
}
  0x11   :  { %s2058_s22 = smov 16   ;;  %s2059_s23 = smov 1  }
  0x12   :  { %32 = dma.hbm_to_vmem [thread:$0]  %s2729_s1, 512, %s27_s13, [#allocation6], %s2058_s22, %s2058_s22, %s2059_s23  }
  0x13   :  { %s2060_s26 = smov [#allocation2]   ;;  %s2061_s28 = smov [#allocation7]  }
  0x14   :  { %s17_s27 = sshll.u32 %s2060_s26, 4  ;;  %s38_s29 = sshll.u32 %s2061_s28, 4  ;;  %s18_s27 = int_to_ptr.vmem [resolvable:$true] %s17_s27  ;;  %s39_s29 = int_to_ptr.vmem [resolvable:$true] %s38_s29 }
  0x15   :  { %s1985_s5 = scalar_lea.hbm %s2728_s0, 128 }
  0x16   :  { %p1986_p8 = scmp.ne.s32.totalorder %s2728_s0, %s1985_s5  ;;  %p1989_p9 = scmp.lt.u32.totalorder %s1985_s5, %s2728_s0 }
  0x18   :  { %p1991_p10 = pnand %p1989_p9, %p1986_p8 }
  0x1a   :  { %1994 = shalt.err (!%p1991_p10)
}
  0x1b   :  { %s1995_s1 = scalar_lea.vmem %s18_s27, 128  ;;  %p2000_p12 = scmp.lt.s32.totalorder %s18_s27, %s18_s27 }
  0x1c   :  { %p1996_p11 = scmp.ne.s32.totalorder %s18_s27, %s1995_s1  ;;  %p2001_p13 = scmp.lt.s32.totalorder %s1995_s1, %s1995_s1 }
  0x1e   :  { %p2002_p0 = por %p2001_p13, %p2000_p12 }
  0x20   :  { %p2003_p1 = pnand %p2002_p0, %p1996_p11 }
  0x22   :  { %2006 = shalt.err (!%p2003_p1)
}
  0x23   :  { %20 = dma.hbm_to_vmem [thread:$0]  %s2728_s0, 128, %s18_s27, [#allocation3]  }
  0x24   :  { %s2007_s14 = scalar_lea.hbm %s2730_s2, 512 }
  0x25   :  { %p2008_p2 = scmp.ne.s32.totalorder %s2730_s2, %s2007_s14  ;;  %p2011_p3 = scmp.lt.u32.totalorder %s2007_s14, %s2730_s2 }
  0x27   :  { %p2013_p4 = pnand %p2011_p3, %p2008_p2 }
  0x29   :  { %2016 = shalt.err (!%p2013_p4)
}
  0x2a   :  { %s2017_s19 = scalar_lea.vmem %s39_s29, 512  ;;  %p2022_p6 = scmp.lt.s32.totalorder %s39_s29, %s39_s29 }
  0x2b   :  { %p2018_p5 = scmp.ne.s32.totalorder %s39_s29, %s2017_s19  ;;  %p2023_p7 = scmp.lt.s32.totalorder %s2017_s19, %s2017_s19 }
  0x2d   :  { %p2024_p8 = por %p2023_p7, %p2022_p6 }
  0x2f   :  { %p2025_p9 = pnand %p2024_p8, %p2018_p5 }
  0x31   :  { %2028 = shalt.err (!%p2025_p9)
}
  0x32   :  { %s2062_s0 = smov 64   ;;  %s2063_s20 = smov 4  }
  0x33   :  { %44 = dma.hbm_to_vmem [thread:$0]  %s2730_s2, 512, %s39_s29, [#allocation6], %s2062_s0, %s2062_s0, %s2063_s20  }
  0x34   :  { %2051 = dma.done.wait [#allocation3], 128  }
  0x35   :  { %2052 = vsyncadd [#allocation3], 4294967168 }
  0x36   :  { %2053 = dma.done.wait [#allocation6], 1024  }
  0x37   :  { %2054 = vsyncadd [#allocation6], 4294966272  ;;  %v272_v0 = vlaneseq  ;;  %v2064_v1 = vmov 1966171168   ;;  %v2125_v5 = vld [vmem:[#allocation2] sm:$0xff]  ;;  %v2065_v8 = vmov 0.0  }
  0x38   :  { %v270_v2 = vunpack.c.l.s4 %v2064_v1  ;;  %v55_v7 = vsub.f32 0.0, %v2125_v5  ;;  %vm61_vm0 = vcmp.ge.f32.partialorder %v2125_v5, -2.2  ;;  %vm64_vm1 = vcmp.ge.f32.partialorder %v2125_v5, -1.8  ;;  %s2068_s2 = smov [#allocation8]  }
  0x39   :  { %v273_v4 = vshrl.u32 %v272_v0, 7  ;;  %vm72_vm2 = vcmp.ge.f32.partialorder %v2125_v5, -1.0  ;;  %v1573_v9 = vsel %vm61_vm0, 1.0, %v2065_v8  ;;  %v1574_v10 = vsel %vm64_vm1, 1.0, %v2065_v8  ;;  %s1563_s23 = sshll.u32 %s2068_s2, 4  ;;  %s1564_s23 = int_to_ptr.vmem [resolvable:$true] %s1563_s23 }
  0x3a   :  { %v271_v3 = vunpack.c.0.s8 %v270_v2  ;;  %vm68_vm3 = vcmp.ge.f32.partialorder %v2125_v5, -1.4  ;;  %v1576_v11 = vsel %vm72_vm2, 1.0, %v2065_v8  ;;  %v56_v12 = vmul.f32 1.442695, %v55_v7  ;;  %s2029_s24 = scalar_lea.vmem %s1564_s23, 128  ;;  %p2034_p11 = scmp.lt.s32.totalorder %s1564_s23, %s1564_s23 }
  0x3b   :  { %v67_v13 = vsub.f32 %v1573_v9, %v1574_v10  ;;  %v1575_v14 = vsel %vm68_vm3, 1.0, %v2065_v8  ;;  %vm76_vm4 = vcmp.ge.f32.partialorder %v2125_v5, -0.6  ;;  %vm80_vm5 = vcmp.ge.f32.partialorder %v2125_v5, -0.2  ;;  %p2030_p10 = scmp.ne.s32.totalorder %s1564_s23, %s2029_s24  ;;  %p2035_p12 = scmp.lt.s32.totalorder %s2029_s24, %s2029_s24 }
  0x3c   :  { %v2127_v6 = vsub.s32 %v271_v3, %v273_v4  ;;  %v71_v15 = vsub.f32 %v1574_v10, %v1575_v14  ;;  %v75_v16 = vsub.f32 %v1575_v14, %v1576_v11  ;;  %v1577_v17 = vsel %vm76_vm4, 1.0, %v2065_v8 }
  0x3d   :  { %1943 = vpow2.f32 %v56_v12  ;;  %v79_v18 = vsub.f32 %v1576_v11, %v1577_v17  ;;  %v1578_v19 = vsel %vm80_vm5, 1.0, %v2065_v8  ;;  %v1585_v20 = vadd.f32 2.2, %v2125_v5  ;;  %p2036_p13 = por %p2035_p12, %p2034_p11 }
  0x3e   :  { %v83_v21 = vsub.f32 %v1577_v17, %v1578_v19  ;;  %v1586_v22 = vadd.f32 1.8, %v2125_v5  ;;  %v1587_v23 = vadd.f32 1.4, %v2125_v5  ;;  %v1588_v24 = vadd.f32 1.0, %v2125_v5 }
  0x3f   :  { %v2147_v25 = vadd.f32 0.6, %v2125_v5  ;;  %v120_v26 = vmul.f32 %v1585_v20, %v67_v13  ;;  %vm84_vm6 = vcmp.ge.f32.partialorder %v2125_v5, 0.2  ;;  %v2151_v27 = vadd.f32 0.2, %v2125_v5  ;;  %p2037_p0 = pnand %p2036_p13, %p2030_p10 }
  0x40   :  { %v121_v28 = vmul.f32 %v1587_v23, %v71_v15  ;;  %v123_v29 = vmul.f32 %v1586_v22, %v71_v15  ;;  %v124_v30 = vmul.f32 %v1588_v24, %v75_v16  ;;  %v126_v31 = vmul.f32 %v1587_v23, %v75_v16 }
  0x41   :  { %v127_v32 = vmul.f32 %v2147_v25, %v79_v18  ;;  %v1579_v33 = vsel %vm84_vm6, 1.0, %v2065_v8  ;;  %v2156_v34 = vadd.f32 -0.2, %v2125_v5  ;;  %v129_v35 = vmul.f32 %v1588_v24, %v79_v18 }
  0x42   :  { %v122_v36 = vsub.f32 %v120_v26, %v121_v28  ;;  %v125_v37 = vsub.f32 %v123_v29, %v124_v30  ;;  %v87_v38 = vsub.f32 %v1578_v19, %v1579_v33  ;;  %v130_v39 = vmul.f32 %v2151_v27, %v83_v21 }
  0x43   :  { %v128_v40 = vsub.f32 %v126_v31, %v127_v32  ;;  %v132_v41 = vmul.f32 %v2147_v25, %v83_v21  ;;  %vm88_vm7 = vcmp.ge.f32.partialorder %v2125_v5, 0.6  ;;  %vm92_vm8 = vcmp.ge.f32.partialorder %v2125_v5, 1.0 }
  0x44   :  { %v150_v42 = vmul.f32 %v1585_v20, %v122_v36  ;;  %v151_v43 = vmul.f32 %v1588_v24, %v125_v37  ;;  %v153_v44 = vmul.f32 %v1586_v22, %v125_v37  ;;  %v131_v45 = vsub.f32 %v129_v35, %v130_v39 }
  0x45   :  { %v154_v46 = vmul.f32 %v2147_v25, %v128_v40  ;;  %v133_v47 = vmul.f32 %v2156_v34, %v87_v38  ;;  %v156_v48 = vmul.f32 %v1587_v23, %v128_v40  ;;  %v1580_v49 = vsel %vm88_vm7, 1.0, %v2065_v8 }
  0x46   :  { %v152_v50 = vsub.f32 %v150_v42, %v151_v43  ;;  %v157_v51 = vmul.f32 %v2151_v27, %v131_v45  ;;  %v159_v52 = vmul.f32 %v1588_v24, %v131_v45  ;;  %v91_v53 = vsub.f32 %v1579_v33, %v1580_v49 }
  0x47   :  { %v1944_v54 = vpop.eup %1943  ;;  %v155_v55 = vsub.f32 %v153_v44, %v154_v46  ;;  %v134_v56 = vsub.f32 %v132_v41, %v133_v47  ;;  %v1581_v57 = vsel %vm92_vm8, 1.0, %v2065_v8  ;;  %v2170_v58 = vadd.f32 -0.6, %v2125_v5 }
  0x48   :  { %v58_v59 = vadd.f32 1.0, %v1944_v54  ;;  %v2172_v60 = vmul.f32 %v1585_v20, %v152_v50  ;;  %v158_v61 = vsub.f32 %v156_v48, %v157_v51  ;;  %v95_v62 = vsub.f32 %v1580_v49, %v1581_v57  ;;  %v201_v50 = vld [vmem:[#allocation5] sm:$0x1]  ;;  %v202_v51 = vld [vmem:[#allocation5 + $0x1] sm:$0x1] }
  0x49   :  { %v2175_v63 = vmul.f32 %v2147_v25, %v155_v55  ;;  %v160_v0 = vmul.f32 %v2156_v34, %v134_v56  ;;  %v180_v1 = vmul.f32 %v1586_v22, %v155_v55  ;;  %v2179_v2 = vadd.f32 -1.0, %v2125_v5 }
  0x4a   :  { %1945 = vrcp.f32 %v58_v59  ;;  %v181_v3 = vmul.f32 %v2151_v27, %v158_v61  ;;  %v183_v4 = vmul.f32 %v1587_v23, %v158_v61  ;;  %v135_v7 = vmul.f32 %v2151_v27, %v87_v38  ;;  %v206_v59 = vld [vmem:[#allocation5 + $0x5] sm:$0x1] }
  0x4b   :  { %v179_v9 = vsub.f32 %v2172_v60, %v2175_v63  ;;  %v161_v10 = vsub.f32 %v159_v52, %v160_v0  ;;  %v136_v11 = vmul.f32 %v2170_v58, %v91_v53  ;;  %v138_v12 = vmul.f32 %v2156_v34, %v91_v53  ;;  %v203_v52 = vld [vmem:[#allocation5 + $0x2] sm:$0x1]  ;;  %v208_v0 = vld [vmem:[#allocation5 + $0x7] sm:$0x1] }
  0x4c   :  { %v182_v13 = vsub.f32 %v180_v1, %v181_v3  ;;  %v139_v14 = vmul.f32 %v2179_v2, %v95_v62  ;;  %v162_v15 = vmul.f32 %v2147_v25, %v134_v56  ;;  %vm96_vm9 = vcmp.ge.f32.partialorder %v2125_v5, 1.4  ;;  %v204_v56 = vld [vmem:[#allocation5 + $0x3] sm:$0x1] }
  0x4d   :  { %v184_v16 = vmul.f32 %v2156_v34, %v161_v10  ;;  %v137_v17 = vsub.f32 %v135_v7, %v136_v11  ;;  %v186_v18 = vmul.f32 %v1588_v24, %v161_v10  ;;  %v1582_v19 = vsel %vm96_vm9, 1.0, %v2065_v8 }
  0x4e   :  { %v140_v20 = vsub.f32 %v138_v12, %v139_v14  ;;  %v99_v21 = vsub.f32 %v1581_v57, %v1582_v19  ;;  %vm100_vm10 = vcmp.ge.f32.partialorder %v2125_v5, 1.8  ;;  %v1594_v22 = vadd.f32 -1.4, %v2125_v5  ;;  %v205_v57 = vld [vmem:[#allocation5 + $0x4] sm:$0x1] }
  0x4f   :  { %v185_v23 = vsub.f32 %v183_v4, %v184_v16  ;;  %v163_v26 = vmul.f32 %v2170_v58, %v137_v17  ;;  %v165_v28 = vmul.f32 %v2151_v27, %v137_v17  ;;  %v1583_v29 = vsel %vm100_vm10, 1.0, %v2065_v8  ;;  %v209_v14 = vld [vmem:[#allocation5 + $0x8] sm:$0x1] }
  0x50   :  { %v166_v30 = vmul.f32 %v2179_v2, %v140_v20  ;;  %v103_v31 = vsub.f32 %v1582_v19, %v1583_v29  ;;  %v1595_v24 = vadd.f32 -1.8, %v2125_v5  ;;  %v141_v32 = vmul.f32 %v2170_v58, %v95_v62  ;;  %v211_v19 = vld [vmem:[#allocation5 + $0xa] sm:$0x1] }
  0x51   :  { %v2200_v33 = vpack.c.bf16 %v185_v23, %v182_v13  ;;  %v164_v35 = vsub.f32 %v162_v15, %v163_v26  ;;  %v142_v36 = vmul.f32 %v1594_v22, %v99_v21  ;;  %v144_v37 = vmul.f32 %v2179_v2, %v99_v21  ;;  %v210_v15 = vld [vmem:[#allocation5 + $0x9] sm:$0x1] }
  0x52   :  { %v167_v38 = vsub.f32 %v165_v28, %v166_v30  ;;  %v145_v39 = vmul.f32 %v1595_v24, %v103_v31  ;;  %v168_v40 = vmul.f32 %v2156_v34, %v140_v20  ;;  %vm104_vm11 = vcmp.ge.f32.partialorder %v2125_v5, 2.2  ;;  %v213_v20 = vld [vmem:[#allocation5 + $0xc] sm:$0x1]  ;;  %v214_v28 = vld [vmem:[#allocation5 + $0xd] sm:$0x1] }
  0x53   :  { %v187_v41 = vmul.f32 %v2170_v58, %v164_v35  ;;  %v189_v42 = vmul.f32 %v2147_v25, %v164_v35  ;;  %v143_v43 = vsub.f32 %v141_v32, %v142_v36  ;;  %v1584_v44 = vsel %vm104_vm11, 1.0, %v2065_v8  ;;  %v216_v30 = vld [vmem:[#allocation5 + $0xf] sm:$0x1] }
  0x54   :  { %v1946_v45 = vpop.eup %1945  ;;  %v190_v46 = vmul.f32 %v2179_v2, %v167_v38  ;;  %v146_v47 = vsub.f32 %v144_v37, %v145_v39  ;;  %v2210_v48 = vmul.f32 %v2151_v27, %v167_v38  ;;  %v107_v49 = vsub.f32 %v1583_v29, %v1584_v44  ;;  %v207_v27 = vld [vmem:[#allocation5 + $0x6] sm:$0x1]  ;;  %v215_v29 = vld [vmem:[#allocation5 + $0xe] sm:$0x1]  ;;  %v218_v38 = vld [vmem:[#allocation5 + $0x11] sm:$0x1] }
  0x55   :  { %v60_v53 = vmul.f32 %v1946_v45, %v2125_v5  ;;  %v188_v54 = vsub.f32 %v186_v18, %v187_v41  ;;  %v169_v55 = vmul.f32 %v1594_v22, %v143_v43  ;;  %v171_v25 = vmul.f32 %v2170_v58, %v143_v43  ;;  %v219_v43 = vld [vmem:[#allocation5 + $0x12] sm:$0x1]  ;;  %v220_v44 = vld [vmem:[#allocation5 + $0x13] sm:$0x1]  ;;  %v221_v45 = vld [vmem:[#allocation5 + $0x14] sm:$0x1] }
  0x56   :  { %v191_v60 = vsub.f32 %v189_v42, %v190_v46  ;;  %v172_v61 = vmul.f32 %v1595_v24, %v146_v47  ;;  %v1596_v62 = vadd.f32 -2.2, %v2125_v5  ;;  %v147_v63 = vmul.f32 %v1594_v22, %v103_v31 }
  0x57   :  { %v1862_v1 = vpack.c.bf16 %v179_v9, %v60_v53  ;;  %v170_v3 = vsub.f32 %v168_v40, %v169_v55  ;;  %v174_v4 = vmul.f32 %v2179_v2, %v146_v47  ;;  %v265_v7 = vcombine.low %v201_v50, %v202_v51  ;;  %v212_v9 = vld [vmem:[#allocation5 + $0xb] sm:$0x1]  ;;  %v222_v50 = vld [vmem:[#allocation5 + $0x15] sm:$0x1]  ;;  %v223_v51 = vld [vmem:[#allocation5 + $0x16] sm:$0x1] }
  0x58   :  { %v2216_v10 = vpack.c.bf16 %v191_v60, %v188_v54  ;;  %v173_v11 = vsub.f32 %v171_v25, %v172_v61  ;;  %v148_v12 = vmul.f32 %v1596_v62, %v107_v49  ;;  %v266_v13 = vcombine.low %v203_v52, %v204_v56  ;;  %v224_v52 = vld [vmem:[#allocation5 + $0x17] sm:$0x1]  ;;  %v225_v60 = vld [vmem:[#allocation5 + $0x18] sm:$0x1]  ;;  %v226_v61 = vld [vmem:[#allocation5 + $0x19] sm:$0x1] }
  0x59   :  { %vm461_vm12 = vcmask 588800   ;;  %1863 = vmatprep.subr.bf16.mxu0 %v1862_v1  ;;  %v193_v16 = vmul.f32 %v1594_v22, %v170_v3  ;;  %v195_v5 = vmul.f32 %v2156_v34, %v170_v3  ;;  %v267_v17 = vcombine.low %v205_v57, %v206_v59 }
  0x5a   :  { %v268_v18 = vcombine.low %v207_v27, %v208_v0  ;;  %1865 = vmatpush3.bf16.msra.mxu0 %v1862_v1  ;;  %v196_v2 = vmul.f32 %v1595_v24, %v173_v11  ;;  %v149_v21 = vsub.f32 %v147_v63, %v148_v12  ;;  %v198_v23 = vmul.f32 %v2170_v58, %v173_v11  ;;  %v217_v58 = vld [vmem:[#allocation5 + $0x10] sm:$0x1]  ;;  %v227_v63 = vld [vmem:[#allocation5 + $0x1a] sm:$0x1]  ;;  %v230_v11 = vld [vmem:[#allocation5 + $0x1d] sm:$0x1] }
  0x5b   :  { %v275_v26 = vrot.slane %v265_v7, %v2127_v6  ;;  %1867 = vmatprep.subr.bf16.mxu0 %v2200_v33  ;;  %v194_v22 = vsub.f32 %v2210_v48, %v193_v16  ;;  %v282_v34 = vrot.slane %v266_v13, %v2127_v6  ;;  %v289_v31 = vrot.slane %v267_v17, %v2127_v6  ;;  %v229_v7 = vld [vmem:[#allocation5 + $0x1c] sm:$0x1]  ;;  %v232_v16 = vld [vmem:[#allocation5 + $0x1f] sm:$0x1] }
  0x5c   :  { %v296_v32 = vrot.slane %v268_v18, %v2127_v6  ;;  %v197_v35 = vsub.f32 %v195_v5, %v196_v2  ;;  %v175_v24 = vmul.f32 %v1596_v62, %v149_v21  ;;  %v314_v36 = vcombine.low %v209_v14, %v210_v15  ;;  %v231_v15 = vld [vmem:[#allocation5 + $0x1e] sm:$0x1] }
  0x5d   :  { %v315_v37 = vcombine.low %v211_v19, %v212_v9  ;;  %v297_v39 = vcombine.low %v275_v26, %v282_v34  ;;  %v316_v41 = vcombine.low %v213_v20, %v214_v28  ;;  %v317_v42 = vcombine.low %v215_v29, %v216_v30 }
  0x5e   :  { %v298_v40 = vcombine.low %v289_v31, %v296_v32  ;;  %1869 = vmatpush3.bf16.msra.mxu0 %v2200_v33  ;;  %v1874_v46 = vpack.c.bf16 %v197_v35, %v194_v22  ;;  %v176_v47 = vsub.f32 %v174_v4, %v175_v24  ;;  %v324_v48 = vrot.slane %v314_v36, %v2127_v6  ;;  %v228_v4 = vld [vmem:[#allocation5 + $0x1b] sm:$0x1] }
  0x5f   :  { %v331_v49 = vrot.slane %v315_v37, %v2127_v6  ;;  %1871 = vmatprep.subr.bf16.mxu0 %v2216_v10  ;;  %v305_v53 = vrot.slane %v297_v39, %v2127_v6  ;;  %v338_v55 = vrot.slane %v316_v41, %v2127_v6  ;;  %v345_v25 = vrot.slane %v317_v42, %v2127_v6  ;;  %v703_v39 = vld [vmem:[#allocation7 + $0x8] sm:$0x1]  ;;  %v704_v41 = vld [vmem:[#allocation7 + $0xc] sm:$0x1] }
  0x60   :  { %v312_v54 = vrot.slane %v298_v40, %v2127_v6  ;;  %v199_v33 = vmul.f32 %v1596_v62, %v176_v47  ;;  %v363_v57 = vcombine.low %v217_v58, %v218_v38  ;;  %v364_v59 = vcombine.low %v219_v43, %v220_v44  ;;  %v702_v38 = vld [vmem:[#allocation7 + $0x4] sm:$0x1]  ;;  %v701_v40 = vld [vmem:[#allocation7] sm:$0x1]  ;;  %v705_v44 = vld [vmem:[#allocation7 + $0x10] sm:$0x1] }
  0x61   :  { %v346_v56 = vcombine.low %v324_v48, %v331_v49  ;;  %v347_v0 = vcombine.low %v338_v55, %v345_v25  ;;  %v365_v1 = vcombine.low %v221_v45, %v222_v50  ;;  %v366_v3 = vcombine.low %v223_v51, %v224_v52  ;;  %v706_v47 = vld [vmem:[#allocation7 + $0x14] sm:$0x1]  ;;  %v1204_v50 = vld [vmem:[#allocation7 + $0x2] sm:$0x1]  ;;  %v1205_v51 = vld [vmem:[#allocation7 + $0x6] sm:$0x1] }
  0x62   :  { %v313_v27 = vcombine.low %v305_v53, %v312_v54  ;;  %1873 = vmatpush3.bf16.msra.mxu0 %v2216_v10  ;;  %v200_v12 = vsub.f32 %v198_v23, %v199_v33  ;;  %v373_v62 = vrot.slane %v363_v57, %v2127_v6  ;;  %v380_v14 = vrot.slane %v364_v59, %v2127_v6  ;;  %v1206_v52 = vld [vmem:[#allocation7 + $0xa] sm:$0x1]  ;;  %v1207_v53 = vld [vmem:[#allocation7 + $0xe] sm:$0x1]  ;;  %v1208_v54 = vld [vmem:[#allocation7 + $0x12] sm:$0x1] }
  0x63   :  { %v354_v13 = vrot.slane %v346_v56, %v2127_v6  ;;  %1875 = vmatprep.subr.bf16.mxu0 %v1874_v46  ;;  %v361_v5 = vrot.slane %v347_v0, %v2127_v6  ;;  %v387_v17 = vrot.slane %v365_v1, %v2127_v6  ;;  %v394_v18 = vrot.slane %v366_v3, %v2127_v6  ;;  %v1209_v55 = vld [vmem:[#allocation7 + $0x16] sm:$0x1]  ;;  %v707_v25 = vld [vmem:[#allocation7 + $0x18] sm:$0x1]  ;;  %v708_v1 = vld [vmem:[#allocation7 + $0x1c] sm:$0x1] }
  0x64   :  { %1772 = vmatprep.mubr.msk.f32.mxu0 %vm461_vm12, %v313_v27  ;;  %v395_v19 = vcombine.low %v373_v62, %v380_v14  ;;  %v412_v10 = vcombine.low %v225_v60, %v226_v61  ;;  %v413_v9 = vcombine.low %v227_v63, %v228_v4  ;;  %v414_v20 = vcombine.low %v229_v7, %v230_v11  ;;  %v1210_v60 = vld [vmem:[#allocation7 + $0x1a] sm:$0x1]  ;;  %v1211_v11 = vld [vmem:[#allocation7 + $0x1e] sm:$0x1] }
  0x65   :  { %v396_v2 = vcombine.low %v387_v17, %v394_v18  ;;  %v415_v21 = vcombine.low %v231_v15, %v232_v16  ;;  %v362_v30 = vcombine.low %v354_v13, %v361_v5  ;;  %v2066_v58 = vmov 0.0|0.0  }
  0x66   :  { %1877 = vmatpush3.bf16.msra.mxu0 %v1874_v46  ;;  %v403_v23 = vrot.slane %v395_v19, %v2127_v6  ;;  %v422_v26 = vrot.slane %v412_v10, %v2127_v6  ;;  %v429_v28 = vrot.slane %v413_v9, %v2127_v6  ;;  %v436_v29 = vrot.slane %v414_v20, %v2127_v6 }
  0x67   :  { %1770 = vmatprep.subr.mxu0 %v200_v12  ;;  %v410_v22 = vrot.slane %v396_v2, %v2127_v6  ;;  %v443_v34 = vrot.slane %v415_v21, %v2127_v6  ;;  %1890 = vmatprep.subr.bf16.mxu1 %v2066_v58  ;;  %vm2067_vm13 = vmmov 0   ;;  %vm872_vm14 = vcmask 1041409  }
  0x68   :  { %v444_v31 = vcombine.low %v422_v26, %v429_v28  ;;  %1817 = vmatprep.mubr.msk.f32.mxu1 %vm2067_vm13, %v2065_v8  ;;  %v974_v42 = vrot.slane %v703_v39, 6  ;;  %vm875_vm15 = vcmask 1042434   ;;  %v976_v45 = vrot.slane %v704_v41, 5 }
  0x69   :  { %v411_v32 = vcombine.low %v403_v23, %v410_v22  ;;  %v445_v35 = vcombine.low %v436_v29, %v443_v34  ;;  %vm878_vm0 = vcmask 1043459   ;;  %vm881_vm1 = vcmask 1044484  }
  0x6a   :  { %1771 = vmatpush3.msra.mxu0 %v200_v12  ;;  %v452_v24 = vrot.slane %v444_v31, %v2127_v6  ;;  %v978_v48 = vrot.slane %v705_v44, 4  ;;  %v980_v33 = vrot.slane %v706_v47, 3  ;;  %v1220_v56 = vrot.slane %v1205_v51, 7 }
  0x6b   :  { %1773 = vmatmul.mubr.msk.f32.vlgmr.msra.gmra.mrb[0].mxu0 %vm461_vm12, %v362_v30  ;;  %v459_v36 = vrot.slane %v445_v35, %v2127_v6  ;;  %1878 = vmatprep.subr.bf16.mxu0 %v2066_v58  ;;  %v972_v6 = vrot.slane %v702_v38, 7  ;;  %v1222_v57 = vrot.slane %v1206_v52, 6  ;;  %vm884_vm2 = vcmask 1045509  }
  0x6c   :  { %1775 = vmatprep.mubr.msk.f32.mxu0 %vm461_vm12, %v411_v32  ;;  %v1224_v61 = vrot.slane %v1207_v53, 5  ;;  %v1226_v63 = vrot.slane %v1208_v54, 4  ;;  %v1221_v27 = vsel %vm872_vm14, %v1220_v56, %v1204_v50  ;;  %v1228_v0 = vrot.slane %v1209_v55, 3 }
  0x6d   :  { %v460_v37 = vcombine.low %v452_v24, %v459_v36  ;;  %v973_v43 = vsel %vm872_vm14, %v972_v6, %v701_v40  ;;  %v982_v3 = vrot.slane %v707_v25, 2  ;;  %v1223_v4 = vsel %vm875_vm15, %v1222_v57, %v1221_v27 }
  0x6e   :  { %v975_v46 = vsel %vm875_vm15, %v974_v42, %v973_v43  ;;  %vm887_vm3 = vcmask 1046534   ;;  %v1225_v12 = vsel %vm878_vm0, %v1224_v61, %v1223_v4  ;;  %v1230_v13 = vrot.slane %v1210_v60, 2 }
  0x6f   :  { %1776 = vmatmul.mubr.msk.f32.gmra.mrb[2].mxu0 %vm461_vm12, %v460_v37  ;;  %v977_v49 = vsel %vm878_vm0, %v976_v45, %v975_v46  ;;  %v1227_v62 = vsel %vm881_vm1, %v1226_v63, %v1225_v12  ;;  %v984_v14 = vrot.slane %v708_v1, 1  ;;  %vm890_vm4 = vcmask 1047559  }
  0x70   :  { %1796 = vmatprep.mubr.msk.f32.mxu0 %vm2067_vm13, %v2065_v8  ;;  %v979_v59 = vsel %vm881_vm1, %v978_v48, %v977_v49  ;;  %v1229_v15 = vsel %vm884_vm2, %v1228_v0, %v1227_v62  ;;  %v1232_v5 = vrot.slane %v1211_v11, 1 }
  0x71   :  { %v981_v7 = vsel %vm884_vm2, %v980_v33, %v979_v59  ;;  %v1231_v17 = vsel %vm887_vm3, %v1230_v13, %v1229_v15 }
  0x72   :  { %v983_v16 = vsel %vm887_vm3, %v982_v3, %v981_v7  ;;  %v2282_v20 = vsel %vm890_vm4, %v1232_v5, %v1231_v17 }
  0x73   :  { %v2274_v19 = vsel %vm890_vm4, %v984_v14, %v983_v16 }
 0x13e   :  { %v2271_v18 = vpop.f32.mrb[0].mxu0 }
 0x13f   :  { %v2276_v10 = vpop.f32.mrb[1].mxu0  ;;  %v709_v9 = vsub.f32 0.0, %v2271_v18  ;;  %vm715_vm5 = vcmp.ge.f32.partialorder %v2271_v18, -2.2  ;;  %vm718_vm6 = vcmp.ge.f32.partialorder %v2271_v18, -1.8 }
 0x140   :  { %v1625_v2 = vsel %vm715_vm5, 1.0, %v2065_v8  ;;  %v1626_v21 = vsel %vm718_vm6, 1.0, %v2065_v8  ;;  %vm722_vm7 = vcmp.ge.f32.partialorder %v2271_v18, -1.4  ;;  %vm726_vm8 = vcmp.ge.f32.partialorder %v2271_v18, -1.0 }
 0x141   :  { %v710_v23 = vmul.f32 1.442695, %v709_v9  ;;  %v721_v26 = vsub.f32 %v1625_v2, %v1626_v21  ;;  %v1627_v28 = vsel %vm722_vm7, 1.0, %v2065_v8  ;;  %v1628_v29 = vsel %vm726_vm8, 1.0, %v2065_v8 }
 0x142   :  { %v2290_v30 = vpop.f32.mrb[2].mxu0  ;;  %v725_v22 = vsub.f32 %v1626_v21, %v1627_v28  ;;  %v729_v34 = vsub.f32 %v1627_v28, %v1628_v29  ;;  %vm730_vm9 = vcmp.ge.f32.partialorder %v2271_v18, -0.6  ;;  %v1637_v31 = vadd.f32 2.2, %v2271_v18 }
 0x143   :  { %v2294_v32 = vpop.f32.mrb[3].mxu0  ;;  %1947 = vpow2.f32 %v710_v23  ;;  %v1629_v35 = vsel %vm730_vm9, 1.0, %v2065_v8  ;;  %v2298_v24 = vadd.f32 1.8, %v2271_v18  ;;  %v2301_v36 = vadd.f32 1.4, %v2271_v18 }
 0x144   :  { %v2303_v37 = vsub.f32 %v1628_v29, %v1629_v35  ;;  %v2306_v38 = vadd.f32 1.0, %v2271_v18  ;;  %v2309_v39 = vadd.f32 0.6, %v2271_v18  ;;  %v774_v6 = vmul.f32 %v1637_v31, %v721_v26 }
 0x145   :  { %v775_v40 = vmul.f32 %v2301_v36, %v725_v22  ;;  %v777_v41 = vmul.f32 %v2298_v24, %v725_v22  ;;  %v780_v42 = vmul.f32 %v2301_v36, %v729_v34  ;;  %v555_v43 = vsub.f32 0.0, %v2276_v10 }
 0x146   :  { %v778_v44 = vmul.f32 %v2306_v38, %v729_v34  ;;  %v781_v45 = vmul.f32 %v2309_v39, %v2303_v37  ;;  %vm561_vm10 = vcmp.ge.f32.partialorder %v2276_v10, -2.2  ;;  %vm564_vm11 = vcmp.ge.f32.partialorder %v2276_v10, -1.8 }
 0x147   :  { %v776_v46 = vsub.f32 %v774_v6, %v775_v40  ;;  %v556_v47 = vmul.f32 1.442695, %v555_v43  ;;  %v1601_v48 = vsel %vm561_vm10, 1.0, %v2065_v8  ;;  %v1602_v49 = vsel %vm564_vm11, 1.0, %v2065_v8 }
 0x148   :  { %v779_v50 = vsub.f32 %v777_v41, %v778_v44  ;;  %v782_v51 = vsub.f32 %v780_v42, %v781_v45  ;;  %v567_v52 = vsub.f32 %v1601_v48, %v1602_v49  ;;  %vm568_vm5 = vcmp.ge.f32.partialorder %v2276_v10, -1.4 }
 0x149   :  { %v804_v53 = vmul.f32 %v1637_v31, %v776_v46  ;;  %1949 = vpow2.f32 %v556_v47  ;;  %v1603_v54 = vsel %vm568_vm5, 1.0, %v2065_v8  ;;  %vm572_vm6 = vcmp.ge.f32.partialorder %v2276_v10, -1.0 }
 0x14a   :  { %v805_v55 = vmul.f32 %v2306_v38, %v779_v50  ;;  %v807_v25 = vmul.f32 %v2298_v24, %v779_v50  ;;  %v808_v33 = vmul.f32 %v2309_v39, %v782_v51  ;;  %v571_v56 = vsub.f32 %v1602_v49, %v1603_v54 }
 0x14b   :  { %v1604_v57 = vsel %vm572_vm6, 1.0, %v2065_v8  ;;  %vm576_vm7 = vcmp.ge.f32.partialorder %v2276_v10, -0.6  ;;  %vm580_vm8 = vcmp.ge.f32.partialorder %v2276_v10, -0.2  ;;  %v2332_v59 = vadd.f32 1.0, %v2276_v10 }
 0x14c   :  { %v806_v60 = vsub.f32 %v804_v53, %v805_v55  ;;  %v809_v61 = vsub.f32 %v807_v25, %v808_v33  ;;  %v575_v63 = vsub.f32 %v1603_v54, %v1604_v57  ;;  %v1605_v27 = vsel %vm576_vm7, 1.0, %v2065_v8 }
 0x14d   :  { %v1948_v0 = vpop.eup %1947  ;;  %v579_v1 = vsub.f32 %v1604_v57, %v1605_v27  ;;  %v1606_v3 = vsel %vm580_vm8, 1.0, %v2065_v8  ;;  %v1613_v4 = vadd.f32 2.2, %v2276_v10  ;;  %v2338_v7 = vadd.f32 1.8, %v2276_v10 }
 0x14e   :  { %v712_v11 = vadd.f32 1.0, %v1948_v0  ;;  %v831_v12 = vmul.f32 %v1637_v31, %v806_v60  ;;  %v832_v13 = vmul.f32 %v2309_v39, %v809_v61  ;;  %v583_v62 = vsub.f32 %v1605_v27, %v1606_v3 }
 0x14f   :  { %v2342_v14 = vadd.f32 1.4, %v2276_v10  ;;  %v2345_v15 = vadd.f32 0.6, %v2276_v10  ;;  %v620_v16 = vmul.f32 %v1613_v4, %v567_v52  ;;  %v623_v5 = vmul.f32 %v2338_v7, %v571_v56 }
 0x150   :  { %1951 = vrcp.f32 %v712_v11  ;;  %v833_v17 = vsub.f32 %v831_v12, %v832_v13  ;;  %v624_v9 = vmul.f32 %v2332_v59, %v575_v63  ;;  %vm734_vm9 = vcmp.ge.f32.partialorder %v2271_v18, -0.2 }
 0x151   :  { %v621_v2 = vmul.f32 %v2342_v14, %v571_v56  ;;  %v626_v21 = vmul.f32 %v2342_v14, %v575_v63  ;;  %v627_v23 = vmul.f32 %v2345_v15, %v579_v1  ;;  %v1630_v26 = vsel %vm734_vm9, 1.0, %v2065_v8 }
 0x152   :  { %v625_v28 = vsub.f32 %v623_v5, %v624_v9  ;;  %v737_v29 = vsub.f32 %v1629_v35, %v1630_v26  ;;  %vm738_vm10 = vcmp.ge.f32.partialorder %v2271_v18, 0.2  ;;  %v2356_v22 = vadd.f32 0.2, %v2271_v18 }
 0x153   :  { %v1950_v34 = vpop.eup %1949  ;;  %v622_v31 = vsub.f32 %v620_v16, %v621_v2  ;;  %v628_v6 = vsub.f32 %v626_v21, %v627_v23  ;;  %v1631_v40 = vsel %vm738_vm10, 1.0, %v2065_v8  ;;  %v2360_v41 = vadd.f32 -0.2, %v2271_v18 }
 0x154   :  { %v558_v42 = vadd.f32 1.0, %v1950_v34  ;;  %v651_v43 = vmul.f32 %v2332_v59, %v625_v28  ;;  %v653_v44 = vmul.f32 %v2338_v7, %v625_v28  ;;  %v2364_v45 = vsub.f32 %v1630_v26, %v1631_v40 }
 0x155   :  { %v650_v35 = vmul.f32 %v1613_v4, %v622_v31  ;;  %v654_v46 = vmul.f32 %v2345_v15, %v628_v6  ;;  %v783_v47 = vmul.f32 %v2306_v38, %v2303_v37  ;;  %v784_v48 = vmul.f32 %v2356_v22, %v737_v29 }
 0x156   :  { %1953 = vrcp.f32 %v558_v42  ;;  %v786_v49 = vmul.f32 %v2309_v39, %v737_v29  ;;  %v787_v50 = vmul.f32 %v2360_v41, %v2364_v45  ;;  %v810_v52 = vmul.f32 %v2301_v36, %v782_v51 }
 0x157   :  { %v652_v53 = vsub.f32 %v650_v35, %v651_v43  ;;  %v655_v54 = vsub.f32 %v653_v44, %v654_v46  ;;  %v785_v55 = vsub.f32 %v783_v47, %v784_v48  ;;  %v834_v25 = vmul.f32 %v2298_v24, %v809_v61 }
 0x158   :  { %v788_v33 = vsub.f32 %v786_v49, %v787_v50  ;;  %vm584_vm11 = vcmp.ge.f32.partialorder %v2276_v10, 0.2  ;;  %v2377_v37 = vadd.f32 0.2, %v2276_v10  ;;  %v2380_v56 = vadd.f32 -0.2, %v2276_v10 }
 0x159   :  { %v677_v57 = vmul.f32 %v1613_v4, %v652_v53  ;;  %v678_v60 = vmul.f32 %v2345_v15, %v655_v54  ;;  %v811_v63 = vmul.f32 %v2356_v22, %v785_v55  ;;  %v813_v51 = vmul.f32 %v2306_v38, %v785_v55 }
 0x15a   :  { %v1952_v27 = vpop.eup %1951  ;;  %v814_v0 = vmul.f32 %v2360_v41, %v788_v33  ;;  %v1607_v24 = vsel %vm584_vm11, 1.0, %v2065_v8  ;;  %v629_v61 = vmul.f32 %v2332_v59, %v579_v1  ;;  %v630_v11 = vmul.f32 %v2377_v37, %v583_v62 }
 0x15b   :  { %v714_v12 = vmul.f32 %v1952_v27, %v2271_v18  ;;  %v679_v13 = vsub.f32 %v677_v57, %v678_v60  ;;  %v812_v16 = vsub.f32 %v810_v52, %v811_v63  ;;  %v587_v4 = vsub.f32 %v1606_v3, %v1607_v24 }
 0x15c   :  { %v815_v5 = vsub.f32 %v813_v51, %v814_v0  ;;  %v631_v9 = vsub.f32 %v629_v61, %v630_v11  ;;  %v632_v2 = vmul.f32 %v2345_v15, %v583_v62  ;;  %v656_v21 = vmul.f32 %v2342_v14, %v628_v6 }
 0x15d   :  { %v1879_v23 = vpack.c.bf16 %v833_v17, %v714_v12  ;;  %v835_v26 = vmul.f32 %v2356_v22, %v812_v16  ;;  %v837_v28 = vmul.f32 %v2301_v36, %v812_v16  ;;  %v633_v1 = vmul.f32 %v2380_v56, %v587_v4 }
 0x15e   :  { %v838_v29 = vmul.f32 %v2360_v41, %v815_v5  ;;  %v657_v34 = vmul.f32 %v2377_v37, %v631_v9  ;;  %v659_v31 = vmul.f32 %v2332_v59, %v631_v9  ;;  %v680_v3 = vmul.f32 %v2338_v7, %v655_v54 }
 0x15f   :  { %1880 = vmatpush3.bf16.msra.mxu0 %v1879_v23  ;;  %v836_v42 = vsub.f32 %v834_v25, %v835_v26  ;;  %v634_v62 = vsub.f32 %v632_v2, %v633_v1  ;;  %vm742_vm5 = vcmp.ge.f32.partialorder %v2271_v18, 0.6  ;;  %vm746_vm6 = vcmp.ge.f32.partialorder %v2271_v18, 1.0 }
 0x160   :  { %v1954_v17 = vpop.eup %1953  ;;  %1881 = vmatprep.subr.bf16.mxu0 %v2066_v58  ;;  %v839_v36 = vsub.f32 %v837_v28, %v838_v29  ;;  %v658_v6 = vsub.f32 %v656_v21, %v657_v34  ;;  %v1632_v43 = vsel %vm742_vm5, 1.0, %v2065_v8  ;;  %v1633_v44 = vsel %vm746_vm6, 1.0, %v2065_v8 }
 0x161   :  { %v560_v35 = vmul.f32 %v1954_v17, %v2276_v10  ;;  %v660_v7 = vmul.f32 %v2380_v56, %v634_v62  ;;  %v745_v46 = vsub.f32 %v1631_v40, %v1632_v43  ;;  %v2406_v47 = vsub.f32 %v1632_v43, %v1633_v44 }
 0x162   :  { %v1882_v48 = vpack.c.bf16 %v839_v36, %v836_v42  ;;  %v681_v49 = vmul.f32 %v2377_v37, %v658_v6  ;;  %v683_v50 = vmul.f32 %v2342_v14, %v658_v6  ;;  %v2411_v52 = vadd.f32 -0.6, %v2271_v18 }
 0x163   :  { %v1891_v53 = vpack.c.bf16 %v679_v13, %v560_v35  ;;  %v661_v54 = vsub.f32 %v659_v31, %v660_v7  ;;  %v2414_v55 = vadd.f32 -1.0, %v2271_v18  ;;  %v789_v25 = vmul.f32 %v2356_v22, %v2364_v45 }
 0x164   :  { %1883 = vmatpush3.bf16.msra.mxu0 %v1882_v48  ;;  %v682_v40 = vsub.f32 %v680_v3, %v681_v49  ;;  %v790_v57 = vmul.f32 %v2411_v52, %v745_v46  ;;  %v792_v60 = vmul.f32 %v2360_v41, %v745_v46  ;;  %v816_v63 = vmul.f32 %v2309_v39, %v788_v33 }
 0x165   :  { %1892 = vmatpush3.bf16.msra.mxu1 %v1891_v53  ;;  %v684_v14 = vmul.f32 %v2380_v56, %v661_v54  ;;  %1884 = vmatprep.subr.bf16.mxu0 %v2066_v58  ;;  %v793_v51 = vmul.f32 %v2414_v55, %v2406_v47  ;;  %v840_v27 = vmul.f32 %v2306_v38, %v815_v5  ;;  %vm588_vm7 = vcmp.ge.f32.partialorder %v2276_v10, 0.6 }
 0x166   :  { %1893 = vmatprep.subr.bf16.mxu1 %v2066_v58  ;;  %v791_v45 = vsub.f32 %v789_v25, %v790_v57  ;;  %v1608_v0 = vsel %vm588_vm7, 1.0, %v2065_v8  ;;  %vm592_vm8 = vcmp.ge.f32.partialorder %v2276_v10, 1.0  ;;  %v2431_v33 = vadd.f32 -0.6, %v2276_v10 }
 0x167   :  { %v685_v61 = vsub.f32 %v683_v50, %v684_v14  ;;  %v794_v11 = vsub.f32 %v792_v60, %v793_v51  ;;  %v591_v12 = vsub.f32 %v1607_v24, %v1608_v0  ;;  %v2434_v13 = vsel %vm592_vm8, 1.0, %v2065_v8 }
 0x168   :  { %v817_v38 = vmul.f32 %v2411_v52, %v791_v45  ;;  %v819_v16 = vmul.f32 %v2356_v22, %v791_v45  ;;  %v2439_v5 = vsub.f32 %v1608_v0, %v2434_v13  ;;  %v2442_v9 = vadd.f32 -1.0, %v2276_v10 }
 0x169   :  { %v1894_v2 = vpack.c.bf16 %v685_v61, %v682_v40  ;;  %v820_v21 = vmul.f32 %v2414_v55, %v794_v11  ;;  %v635_v23 = vmul.f32 %v2377_v37, %v587_v4  ;;  %v636_v24 = vmul.f32 %v2431_v33, %v591_v12 }
 0x16a   :  { %v818_v26 = vsub.f32 %v816_v63, %v817_v38  ;;  %v638_v28 = vmul.f32 %v2380_v56, %v591_v12  ;;  %v639_v1 = vmul.f32 %v2442_v9, %v2439_v5  ;;  %v662_v29 = vmul.f32 %v2345_v15, %v634_v62 }
 0x16b   :  { %1895 = vmatpush3.bf16.msra.mxu1 %v1894_v2  ;;  %v821_v34 = vsub.f32 %v819_v16, %v820_v21  ;;  %v637_v31 = vsub.f32 %v635_v23, %v636_v24  ;;  %v686_v3 = vmul.f32 %v2332_v59, %v661_v54  ;;  %vm750_vm9 = vcmp.ge.f32.partialorder %v2271_v18, 1.4 }
 0x16c   :  { %v841_v42 = vmul.f32 %v2411_v52, %v818_v26  ;;  %v843_v4 = vmul.f32 %v2309_v39, %v818_v26  ;;  %1896 = vmatprep.subr.bf16.mxu1 %v2066_v58  ;;  %v640_v17 = vsub.f32 %v638_v28, %v639_v1  ;;  %v1634_v36 = vsel %vm750_vm9, 1.0, %v2065_v8 }
 0x16d   :  { %v844_v6 = vmul.f32 %v2414_v55, %v821_v34  ;;  %v663_v62 = vmul.f32 %v2431_v33, %v637_v31  ;;  %v665_v43 = vmul.f32 %v2377_v37, %v637_v31  ;;  %v753_v35 = vsub.f32 %v1633_v44, %v1634_v36 }
 0x16e   :  { %v842_v7 = vsub.f32 %v840_v27, %v841_v42  ;;  %v666_v59 = vmul.f32 %v2442_v9, %v640_v17  ;;  %vm754_vm10 = vcmp.ge.f32.partialorder %v2271_v18, 1.8  ;;  %v1646_v46 = vadd.f32 -1.4, %v2271_v18 }
 0x16f   :  { %v845_v39 = vsub.f32 %v843_v4, %v844_v6  ;;  %v664_v48 = vsub.f32 %v662_v29, %v663_v62  ;;  %v1635_v49 = vsel %vm754_vm10, 1.0, %v2065_v8  ;;  %v1647_v50 = vadd.f32 -1.8, %v2271_v18 }
 0x170   :  { %v667_v53 = vsub.f32 %v665_v43, %v666_v59  ;;  %v757_v54 = vsub.f32 %v1634_v36, %v1635_v49  ;;  %v795_v25 = vmul.f32 %v2411_v52, %v2406_v47  ;;  %v796_v40 = vmul.f32 %v1646_v46, %v753_v35 }
 0x171   :  { %v1885_v44 = vpack.c.bf16 %v845_v39, %v842_v7  ;;  %v687_v57 = vmul.f32 %v2431_v33, %v664_v48  ;;  %v689_v60 = vmul.f32 %v2345_v15, %v664_v48  ;;  %v798_v63 = vmul.f32 %v2414_v55, %v753_v35 }
 0x172   :  { %v690_v14 = vmul.f32 %v2442_v9, %v667_v53  ;;  %v797_v51 = vsub.f32 %v795_v25, %v796_v40  ;;  %v799_v27 = vmul.f32 %v1647_v50, %v757_v54  ;;  %v822_v45 = vmul.f32 %v2360_v41, %v794_v11 }
 0x173   :  { %1886 = vmatpush3.bf16.msra.mxu0 %v1885_v44  ;;  %v688_v0 = vsub.f32 %v686_v3, %v687_v57  ;;  %v846_v61 = vmul.f32 %v2356_v22, %v821_v34  ;;  %vm596_vm11 = vcmp.ge.f32.partialorder %v2276_v10, 1.4  ;;  %vm600_vm5 = vcmp.ge.f32.partialorder %v2276_v10, 1.8 }
 0x174   :  { %v691_v47 = vsub.f32 %v689_v60, %v690_v14  ;;  %1887 = vmatprep.subr.bf16.mxu0 %v2066_v58  ;;  %v800_v15 = vsub.f32 %v798_v63, %v799_v27  ;;  %v823_v12 = vmul.f32 %v1646_v46, %v797_v51  ;;  %v825_v38 = vmul.f32 %v2411_v52, %v797_v51 }
 0x175   :  { %v1610_v16 = vsel %vm596_vm11, 1.0, %v2065_v8  ;;  %v1611_v2 = vsel %vm600_vm5, 1.0, %v2065_v8  ;;  %v1622_v11 = vadd.f32 -1.4, %v2276_v10  ;;  %v1623_v21 = vadd.f32 -1.8, %v2276_v10 }
 0x176   :  { %v1897_v22 = vpack.c.bf16 %v691_v47, %v688_v0  ;;  %v824_v23 = vsub.f32 %v822_v45, %v823_v12  ;;  %v826_v24 = vmul.f32 %v1647_v50, %v800_v15  ;;  %v599_v26 = vsub.f32 %v2434_v13, %v1610_v16 }
 0x177   :  { %v603_v28 = vsub.f32 %v1610_v16, %v1611_v2  ;;  %v641_v1 = vmul.f32 %v2431_v33, %v2439_v5  ;;  %v668_v29 = vmul.f32 %v2380_v56, %v640_v17  ;;  %v692_v34 = vmul.f32 %v2377_v37, %v667_v53 }
 0x178   :  { %1898 = vmatpush3.bf16.msra.mxu1 %v1897_v22  ;;  %v827_v31 = vsub.f32 %v825_v38, %v826_v24  ;;  %v847_v3 = vmul.f32 %v1646_v46, %v824_v23  ;;  %v849_v42 = vmul.f32 %v2360_v41, %v824_v23  ;;  %v642_v4 = vmul.f32 %v1622_v11, %v599_v26 }
 0x179   :  { %1899 = vmatprep.subr.bf16.mxu1 %v2066_v58  ;;  %v644_v36 = vmul.f32 %v2442_v9, %v599_v26  ;;  %v645_v6 = vmul.f32 %v1623_v21, %v603_v28  ;;  %vm758_vm6 = vcmp.ge.f32.partialorder %v2271_v18, 2.2  ;;  %v1648_v13 = vadd.f32 -2.2, %v2271_v18 }
 0x17a   :  { %v848_v5 = vsub.f32 %v846_v61, %v847_v3  ;;  %v850_v62 = vmul.f32 %v1647_v50, %v827_v31  ;;  %v643_v17 = vsub.f32 %v641_v1, %v642_v4  ;;  %v1636_v37 = vsel %vm758_vm6, 1.0, %v2065_v8 }
 0x17b   :  { %v646_v43 = vsub.f32 %v644_v36, %v645_v6  ;;  %v761_v35 = vsub.f32 %v1635_v49, %v1636_v37  ;;  %v801_v7 = vmul.f32 %v1646_v46, %v757_v54  ;;  %v828_v41 = vmul.f32 %v2414_v55, %v800_v15 }
 0x17c   :  { %v851_v59 = vsub.f32 %v849_v42, %v850_v62  ;;  %v669_v39 = vmul.f32 %v1622_v11, %v643_v17  ;;  %v671_v48 = vmul.f32 %v2431_v33, %v643_v17  ;;  %v852_v53 = vmul.f32 %v2411_v52, %v827_v31 }
 0x17d   :  { %v672_v25 = vmul.f32 %v1623_v21, %v646_v43  ;;  %v802_v40 = vmul.f32 %v1648_v13, %v761_v35  ;;  %vm604_vm7 = vcmp.ge.f32.partialorder %v2276_v10, 2.2  ;;  %v1624_v18 = vadd.f32 -2.2, %v2276_v10 }
 0x17e   :  { %v1888_v50 = vpack.c.bf16 %v851_v59, %v848_v5  ;;  %v670_v44 = vsub.f32 %v668_v29, %v669_v39  ;;  %v1612_v57 = vsel %vm604_vm7, 1.0, %v2065_v8  ;;  %v647_v49 = vmul.f32 %v1622_v11, %v603_v28 }
 0x17f   :  { %v673_v46 = vsub.f32 %v671_v48, %v672_v25  ;;  %v803_v54 = vsub.f32 %v801_v7, %v802_v40  ;;  %v607_v55 = vsub.f32 %v1611_v2, %v1612_v57  ;;  %v674_v60 = vmul.f32 %v2442_v9, %v646_v43 }
 0x180   :  { %1889 = vmatpush3.bf16.msra.mxu0 %v1888_v50  ;;  %v693_v63 = vmul.f32 %v1622_v11, %v670_v44  ;;  %v695_v52 = vmul.f32 %v2380_v56, %v670_v44  ;;  %v1058_v14 = vsub.f32 0.0, %v2294_v32  ;;  %vm1064_vm8 = vcmp.ge.f32.partialorder %v2294_v32, -2.2 }
 0x181   :  { %v696_v51 = vmul.f32 %v1623_v21, %v673_v46  ;;  %1794 = vmatprep.subr.mxu0 %v2065_v8  ;;  %v829_v10 = vmul.f32 %v1648_v13, %v803_v54  ;;  %v648_v27 = vmul.f32 %v1624_v18, %v607_v55  ;;  %v698_v45 = vmul.f32 %v2431_v33, %v673_v46 }
 0x182   :  { %v694_v0 = vsub.f32 %v692_v34, %v693_v63  ;;  %v1059_v61 = vmul.f32 1.442695, %v1058_v14  ;;  %v1651_v47 = vsel %vm1064_vm8, 1.0, %v2065_v8  ;;  %vm1067_vm9 = vcmp.ge.f32.partialorder %v2294_v32, -1.8 }
 0x183   :  { %v697_v9 = vsub.f32 %v695_v52, %v696_v51  ;;  %v830_v15 = vsub.f32 %v828_v41, %v829_v10  ;;  %v649_v56 = vsub.f32 %v647_v49, %v648_v27  ;;  %v1652_v12 = vsel %vm1067_vm9, 1.0, %v2065_v8 }
 0x184   :  { %1955 = vpow2.f32 %v1059_v61  ;;  %v1070_v38 = vsub.f32 %v1651_v47, %v1652_v12  ;;  %vm1071_vm10 = vcmp.ge.f32.partialorder %v2294_v32, -1.4  ;;  %vm1075_vm11 = vcmp.ge.f32.partialorder %v2294_v32, -1.0 }
 0x185   :  { %v1900_v16 = vpack.c.bf16 %v697_v9, %v694_v0  ;;  %v853_v2 = vmul.f32 %v1648_v13, %v830_v15  ;;  %v675_v33 = vmul.f32 %v1624_v18, %v649_v56  ;;  %v1653_v11 = vsel %vm1071_vm10, 1.0, %v2065_v8 }
 0x186   :  { %v1074_v21 = vsub.f32 %v1652_v12, %v1653_v11  ;;  %v1654_v22 = vsel %vm1075_vm11, 1.0, %v2065_v8  ;;  %vm1079_vm5 = vcmp.ge.f32.partialorder %v2294_v32, -0.6  ;;  %v1663_v23 = vadd.f32 2.2, %v2294_v32 }
 0x187   :  { %1901 = vmatpush3.bf16.msra.mxu1 %v1900_v16  ;;  %v854_v24 = vsub.f32 %v852_v53, %v853_v2  ;;  %v676_v26 = vsub.f32 %v674_v60, %v675_v33  ;;  %v1078_v28 = vsub.f32 %v1653_v11, %v1654_v22  ;;  %v1655_v1 = vsel %vm1079_vm5, 1.0, %v2065_v8 }
 0x188   :  { %1815 = vmatprep.subr.mxu1 %v2065_v8  ;;  %v1082_v29 = vsub.f32 %v1654_v22, %v1655_v1  ;;  %v1664_v34 = vadd.f32 1.8, %v2294_v32  ;;  %v2517_v31 = vadd.f32 1.4, %v2294_v32  ;;  %v2520_v3 = vadd.f32 1.0, %v2294_v32 }
 0x189   :  { %1795 = vmatpush3.msra.mxu0 %v854_v24  ;;  %v699_v42 = vmul.f32 %v1624_v18, %v676_v26  ;;  %v2523_v4 = vadd.f32 0.6, %v2294_v32  ;;  %v1123_v36 = vmul.f32 %v1663_v23, %v1070_v38  ;;  %vm1083_vm6 = vcmp.ge.f32.partialorder %v2294_v32, -0.2 }
 0x18a   :  { %v1124_v6 = vmul.f32 %v2517_v31, %v1074_v21  ;;  %v1126_v13 = vmul.f32 %v1664_v34, %v1074_v21  ;;  %v1127_v5 = vmul.f32 %v2520_v3, %v1078_v28  ;;  %v1129_v62 = vmul.f32 %v2517_v31, %v1078_v28 }
 0x18b   :  { %v700_v17 = vsub.f32 %v698_v45, %v699_v42  ;;  %v1130_v37 = vmul.f32 %v2523_v4, %v1082_v29  ;;  %v1656_v43 = vsel %vm1083_vm6, 1.0, %v2065_v8  ;;  %vm1087_vm7 = vcmp.ge.f32.partialorder %v2294_v32, 0.2 }
 0x18c   :  { %v1125_v35 = vsub.f32 %v1123_v36, %v1124_v6  ;;  %v1128_v7 = vsub.f32 %v1126_v13, %v1127_v5  ;;  %v1086_v41 = vsub.f32 %v1655_v1, %v1656_v43  ;;  %v1657_v59 = vsel %vm1087_vm7, 1.0, %v2065_v8 }
 0x18d   :  { %1816 = vmatpush3.msra.mxu1 %v700_v17  ;;  %v1131_v39 = vsub.f32 %v1129_v62, %v1130_v37  ;;  %v1090_v48 = vsub.f32 %v1656_v43, %v1657_v59  ;;  %v2534_v53 = vadd.f32 0.2, %v2294_v32  ;;  %v2537_v25 = vadd.f32 -0.2, %v2294_v32 }
 0x18e   :  { %v1956_v40 = vpop.eup %1955  ;;  %1902 = vmatprep.subr.bf16.mxu1 %v2066_v58  ;;  %1818 = vmatmul.mubr.msk.f32.vlgmr.msra.gmra.mrb[0].mxu1 %vm461_vm12, %v2274_v19  ;;  %v1153_v18 = vmul.f32 %v1663_v23, %v1125_v35  ;;  %v1154_v50 = vmul.f32 %v2520_v3, %v1128_v7  ;;  %v1156_v44 = vmul.f32 %v1664_v34, %v1128_v7  ;;  %vm1091_vm8 = vcmp.ge.f32.partialorder %v2294_v32, 0.6 }
 0x18f   :  { %v1061_v57 = vadd.f32 1.0, %v1956_v40  ;;  %v1157_v49 = vmul.f32 %v2523_v4, %v1131_v39  ;;  %v1132_v46 = vmul.f32 %v2520_v3, %v1082_v29  ;;  %v1133_v54 = vmul.f32 %v2534_v53, %v1086_v41  ;;  %1838 = vmatprep.mubr.msk.f32.mxu1 %vm2067_vm13, %v2065_v8 }
 0x190   :  { %v1155_v55 = vsub.f32 %v1153_v18, %v1154_v50  ;;  %v1135_v60 = vmul.f32 %v2523_v4, %v1086_v41  ;;  %v1136_v19 = vmul.f32 %v2537_v25, %v1090_v48  ;;  %v1159_v63 = vmul.f32 %v2517_v31, %v1131_v39 }
 0x191   :  { %1957 = vrcp.f32 %v1061_v57  ;;  %v1158_v52 = vsub.f32 %v1156_v44, %v1157_v49  ;;  %v1134_v14 = vsub.f32 %v1132_v46, %v1133_v54  ;;  %v1658_v51 = vsel %vm1091_vm8, 1.0, %v2065_v8 }
 0x192   :  { %v1180_v10 = vmul.f32 %v1663_v23, %v1155_v55  ;;  %v1137_v27 = vsub.f32 %v1135_v60, %v1136_v19  ;;  %v1094_v45 = vsub.f32 %v1657_v59, %v1658_v51  ;;  %vm1095_vm9 = vcmp.ge.f32.partialorder %v2294_v32, 1.0 }
 0x193   :  { %v1181_v0 = vmul.f32 %v2523_v4, %v1158_v52  ;;  %v1160_v61 = vmul.f32 %v2534_v53, %v1134_v14  ;;  %v1162_v47 = vmul.f32 %v2520_v3, %v1134_v14  ;;  %v1183_v9 = vmul.f32 %v1664_v34, %v1158_v52 }
 0x194   :  { %v1163_v15 = vmul.f32 %v2537_v25, %v1137_v27  ;;  %v1659_v56 = vsel %vm1095_vm9, 1.0, %v2065_v8  ;;  %v2560_v12 = vadd.f32 -0.6, %v2294_v32  ;;  %v1671_v38 = vadd.f32 -1.0, %v2294_v32 }
 0x195   :  { %v1182_v16 = vsub.f32 %v1180_v10, %v1181_v0  ;;  %v1161_v2 = vsub.f32 %v1159_v63, %v1160_v61  ;;  %v1098_v33 = vsub.f32 %v1658_v51, %v1659_v56  ;;  %v1138_v11 = vmul.f32 %v2534_v53, %v1090_v48 }
 0x196   :  { %v1164_v21 = vsub.f32 %v1162_v47, %v1163_v15  ;;  %v1139_v22 = vmul.f32 %v2560_v12, %v1094_v45  ;;  %v1141_v23 = vmul.f32 %v2537_v25, %v1094_v45  ;;  %v1165_v24 = vmul.f32 %v2523_v4, %v1137_v27 }
 0x197   :  { %v1184_v26 = vmul.f32 %v2534_v53, %v1161_v2  ;;  %v1186_v28 = vmul.f32 %v2517_v31, %v1161_v2  ;;  %v1142_v1 = vmul.f32 %v1671_v38, %v1098_v33  ;;  %vm1099_vm10 = vcmp.ge.f32.partialorder %v2294_v32, 1.4 }
 0x198   :  { %v1187_v29 = vmul.f32 %v2537_v25, %v1164_v21  ;;  %v1140_v34 = vsub.f32 %v1138_v11, %v1139_v22  ;;  %v1189_v42 = vmul.f32 %v2520_v3, %v1164_v21  ;;  %v1660_v36 = vsel %vm1099_vm10, 1.0, %v2065_v8 }
 0x199   :  { %v1185_v6 = vsub.f32 %v1183_v9, %v1184_v26  ;;  %v1143_v13 = vsub.f32 %v1141_v23, %v1142_v1  ;;  %v1102_v5 = vsub.f32 %v1659_v56, %v1660_v36  ;;  %vm1103_vm11 = vcmp.ge.f32.partialorder %v2294_v32, 1.8 }
 0x19a   :  { %v1188_v62 = vsub.f32 %v1186_v28, %v1187_v29  ;;  %v1166_v17 = vmul.f32 %v2560_v12, %v1140_v34  ;;  %v1168_v31 = vmul.f32 %v2534_v53, %v1140_v34  ;;  %v1661_v37 = vsel %vm1103_vm11, 1.0, %v2065_v8 }
 0x19b   :  { %v1958_v43 = vpop.eup %1957  ;;  %v1169_v35 = vmul.f32 %v1671_v38, %v1143_v13  ;;  %v1106_v7 = vsub.f32 %v1660_v36, %v1661_v37  ;;  %v1672_v41 = vadd.f32 -1.4, %v2294_v32  ;;  %v1673_v3 = vadd.f32 -1.8, %v2294_v32 }
 0x19c   :  { %v1063_v59 = vmul.f32 %v1958_v43, %v2294_v32  ;;  %v1906_v39 = vpack.c.bf16 %v1188_v62, %v1185_v6  ;;  %v1167_v48 = vsub.f32 %v1165_v24, %v1166_v17  ;;  %v1144_v40 = vmul.f32 %v2560_v12, %v1098_v33 }
 0x19d   :  { %v1170_v18 = vsub.f32 %v1168_v31, %v1169_v35  ;;  %v1145_v50 = vmul.f32 %v1672_v41, %v1102_v5  ;;  %v1147_v44 = vmul.f32 %v1671_v38, %v1102_v5  ;;  %v1148_v57 = vmul.f32 %v1673_v3, %v1106_v7 }
 0x19e   :  { %v1903_v49 = vpack.c.bf16 %v1182_v16, %v1063_v59  ;;  %v1190_v46 = vmul.f32 %v2560_v12, %v1167_v48  ;;  %v1192_v54 = vmul.f32 %v2523_v4, %v1167_v48  ;;  %v1171_v55 = vmul.f32 %v2537_v25, %v1143_v13 }
 0x19f   :  { %v1193_v60 = vmul.f32 %v1671_v38, %v1170_v18  ;;  %v1146_v19 = vsub.f32 %v1144_v40, %v1145_v50  ;;  %v1149_v63 = vsub.f32 %v1147_v44, %v1148_v57  ;;  %v1195_v52 = vmul.f32 %v2534_v53, %v1170_v18 }
 0x1a0   :  { %1904 = vmatpush3.bf16.msra.mxu1 %v1903_v49  ;;  %v1191_v14 = vsub.f32 %v1189_v42, %v1190_v46  ;;  %vm1107_vm5 = vcmp.ge.f32.partialorder %v2294_v32, 2.2  ;;  %v1674_v51 = vadd.f32 -2.2, %v2294_v32  ;;  %v1150_v10 = vmul.f32 %v1672_v41, %v1106_v7 }
 0x1a1   :  { %1905 = vmatprep.subr.bf16.mxu1 %v2066_v58  ;;  %v1194_v27 = vsub.f32 %v1192_v54, %v1193_v60  ;;  %v1172_v45 = vmul.f32 %v1672_v41, %v1146_v19  ;;  %v1174_v4 = vmul.f32 %v2560_v12, %v1146_v19  ;;  %v1175_v0 = vmul.f32 %v1673_v3, %v1149_v63 }
 0x1a2   :  { %v1662_v61 = vsel %vm1107_vm5, 1.0, %v2065_v8  ;;  %v1177_v47 = vmul.f32 %v1671_v38, %v1149_v63  ;;  %v1307_v9 = vsub.f32 0.0, %v2290_v30  ;;  %vm1313_vm6 = vcmp.ge.f32.partialorder %v2290_v30, -2.2 }
 0x1a3   :  { %v1909_v53 = vpack.c.bf16 %v1194_v27, %v1191_v14  ;;  %v1173_v15 = vsub.f32 %v1171_v55, %v1172_v45  ;;  %v1176_v56 = vsub.f32 %v1174_v4, %v1175_v0  ;;  %v1110_v16 = vsub.f32 %v1661_v37, %v1662_v61 }
 0x1a4   :  { %1907 = vmatpush3.bf16.msra.mxu1 %v1906_v39  ;;  %v1308_v32 = vmul.f32 1.442695, %v1307_v9  ;;  %v1676_v2 = vsel %vm1313_vm6, 1.0, %v2065_v8  ;;  %vm1316_vm7 = vcmp.ge.f32.partialorder %v2290_v30, -1.8  ;;  %vm1324_vm8 = vcmp.ge.f32.partialorder %v2290_v30, -1.0 }
 0x1a5   :  { %1908 = vmatprep.subr.bf16.mxu1 %v2066_v58  ;;  %v1196_v33 = vmul.f32 %v1672_v41, %v1173_v15  ;;  %v1198_v38 = vmul.f32 %v2537_v25, %v1173_v15  ;;  %v1199_v11 = vmul.f32 %v1673_v3, %v1176_v56  ;;  %v1151_v21 = vmul.f32 %v1674_v51, %v1110_v16 }
 0x1a6   :  { %v1201_v22 = vmul.f32 %v2560_v12, %v1176_v56  ;;  %1959 = vpow2.f32 %v1308_v32  ;;  %v1677_v23 = vsel %vm1316_vm7, 1.0, %v2065_v8  ;;  %vm1320_vm9 = vcmp.ge.f32.partialorder %v2290_v30, -1.4 }
 0x1a7   :  { %v1197_v24 = vsub.f32 %v1195_v52, %v1196_v33  ;;  %v1200_v26 = vsub.f32 %v1198_v38, %v1199_v11  ;;  %v1152_v28 = vsub.f32 %v1150_v10, %v1151_v21  ;;  %v1319_v1 = vsub.f32 %v1676_v2, %v1677_v23 }
 0x1a8   :  { %1910 = vmatpush3.bf16.msra.mxu1 %v1909_v53  ;;  %v1678_v29 = vsel %vm1320_vm9, 1.0, %v2065_v8  ;;  %v1679_v25 = vsel %vm1324_vm8, 1.0, %v2065_v8  ;;  %vm1328_vm10 = vcmp.ge.f32.partialorder %v2290_v30, -0.6  ;;  %v1688_v12 = vadd.f32 2.2, %v2290_v30 }
 0x1a9   :  { %1911 = vmatprep.subr.bf16.mxu1 %v2066_v58  ;;  %v1912_v34 = vpack.c.bf16 %v1200_v26, %v1197_v24  ;;  %v1178_v42 = vmul.f32 %v1674_v51, %v1152_v28  ;;  %v1323_v36 = vsub.f32 %v1677_v23, %v1678_v29  ;;  %v1327_v6 = vsub.f32 %v1678_v29, %v1679_v25 }
 0x1aa   :  { %v1680_v13 = vsel %vm1328_vm10, 1.0, %v2065_v8  ;;  %v1689_v5 = vadd.f32 1.8, %v2290_v30  ;;  %v2610_v62 = vadd.f32 1.4, %v2290_v30  ;;  %v2613_v17 = vadd.f32 1.0, %v2290_v30 }
 0x1ab   :  { %v1179_v31 = vsub.f32 %v1177_v47, %v1178_v42  ;;  %v1331_v37 = vsub.f32 %v1679_v25, %v1680_v13  ;;  %v2616_v43 = vadd.f32 0.6, %v2290_v30  ;;  %v1372_v35 = vmul.f32 %v1688_v12, %v1319_v1 }
 0x1ac   :  { %1913 = vmatpush3.bf16.msra.mxu1 %v1912_v34  ;;  %v1373_v7 = vmul.f32 %v2610_v62, %v1323_v36  ;;  %v1375_v41 = vmul.f32 %v1689_v5, %v1323_v36  ;;  %v1376_v3 = vmul.f32 %v2613_v17, %v1327_v6  ;;  %v1378_v59 = vmul.f32 %v2610_v62, %v1327_v6 }
 0x1ad   :  { %1836 = vmatprep.subr.mxu1 %v2065_v8  ;;  %v1202_v39 = vmul.f32 %v1674_v51, %v1179_v31  ;;  %v1379_v48 = vmul.f32 %v2616_v43, %v1331_v37  ;;  %vm1332_vm11 = vcmp.ge.f32.partialorder %v2290_v30, -0.2  ;;  %vm1336_vm5 = vcmp.ge.f32.partialorder %v2290_v30, 0.2 }
 0x1ae   :  { %v1374_v40 = vsub.f32 %v1372_v35, %v1373_v7  ;;  %v1377_v18 = vsub.f32 %v1375_v41, %v1376_v3  ;;  %v1681_v50 = vsel %vm1332_vm11, 1.0, %v2065_v8  ;;  %v1682_v44 = vsel %vm1336_vm5, 1.0, %v2065_v8 }
 0x1af   :  { %v1203_v57 = vsub.f32 %v1201_v22, %v1202_v39  ;;  %v1380_v49 = vsub.f32 %v1378_v59, %v1379_v48  ;;  %v1335_v46 = vsub.f32 %v1680_v13, %v1681_v50  ;;  %v1339_v54 = vsub.f32 %v1681_v50, %v1682_v44 }
 0x1b0   :  { %v1960_v55 = vpop.eup %1959  ;;  %v1402_v60 = vmul.f32 %v1688_v12, %v1374_v40  ;;  %v1403_v19 = vmul.f32 %v2613_v17, %v1377_v18  ;;  %v1405_v63 = vmul.f32 %v1689_v5, %v1377_v18  ;;  %v2629_v52 = vadd.f32 0.2, %v2290_v30 }
 0x1b1   :  { %1837 = vmatpush3.msra.mxu1 %v1203_v57  ;;  %v1310_v14 = vadd.f32 1.0, %v1960_v55  ;;  %v1406_v51 = vmul.f32 %v2616_v43, %v1380_v49  ;;  %v2633_v10 = vadd.f32 -0.2, %v2290_v30  ;;  %v1381_v27 = vmul.f32 %v2613_v17, %v1331_v37 }
 0x1b2   :  { %1914 = vmatprep.subr.bf16.mxu1 %v2066_v58  ;;  %1839 = vmatmul.mubr.msk.f32.vlgmr.msra.gmra.mrb[0].mxu1 %vm461_vm12, %v2282_v20  ;;  %v1404_v45 = vsub.f32 %v1402_v60, %v1403_v19  ;;  %v1382_v4 = vmul.f32 %v2629_v52, %v1335_v46  ;;  %v1384_v0 = vmul.f32 %v2616_v43, %v1335_v46  ;;  %vm1340_vm6 = vcmp.ge.f32.partialorder %v2290_v30, 0.6  ;;  %v856_v60 = vld [vmem:[#allocation7 + $0x5] sm:$0x1]  ;;  %v857_v19 = vld [vmem:[#allocation7 + $0x9] sm:$0x1] }
 0x1b3   :  { %1961 = vrcp.f32 %v1310_v14  ;;  %v1407_v61 = vsub.f32 %v1405_v63, %v1406_v51  ;;  %v1385_v47 = vmul.f32 %v2633_v10, %v1339_v54  ;;  %v1408_v9 = vmul.f32 %v2610_v62, %v1380_v49  ;;  %1859 = vmatprep.mubr.msk.f32.mxu1 %vm2067_vm13, %v2065_v8 }
 0x1b4   :  { %v1429_v53 = vmul.f32 %v1688_v12, %v1404_v45  ;;  %v1383_v15 = vsub.f32 %v1381_v27, %v1382_v4  ;;  %v1683_v20 = vsel %vm1340_vm6, 1.0, %v2065_v8  ;;  %vm1344_vm7 = vcmp.ge.f32.partialorder %v2290_v30, 1.0  ;;  %v855_v45 = vld [vmem:[#allocation7 + $0x1] sm:$0x1] }
 0x1b5   :  { %v1430_v56 = vmul.f32 %v2616_v43, %v1407_v61  ;;  %v1386_v16 = vsub.f32 %v1384_v0, %v1385_v47  ;;  %v1432_v32 = vmul.f32 %v1689_v5, %v1407_v61  ;;  %v1343_v2 = vsub.f32 %v1682_v44, %v1683_v20 }
 0x1b6   :  { %v1409_v33 = vmul.f32 %v2629_v52, %v1383_v15  ;;  %v1411_v38 = vmul.f32 %v2613_v17, %v1383_v15  ;;  %v1684_v11 = vsel %vm1344_vm7, 1.0, %v2065_v8  ;;  %v2653_v21 = vadd.f32 -0.6, %v2290_v30  ;;  %v860_v15 = vld [vmem:[#allocation7 + $0x15] sm:$0x1] }
 0x1b7   :  { %v1431_v22 = vsub.f32 %v1429_v53, %v1430_v56  ;;  %v1412_v23 = vmul.f32 %v2633_v10, %v1386_v16  ;;  %v1347_v24 = vsub.f32 %v1683_v20, %v1684_v11  ;;  %v2657_v26 = vadd.f32 -1.0, %v2290_v30  ;;  %v859_v53 = vld [vmem:[#allocation7 + $0x11] sm:$0x1] }
 0x1b8   :  { %v1410_v28 = vsub.f32 %v1408_v9, %v1409_v33  ;;  %v1387_v1 = vmul.f32 %v2629_v52, %v1339_v54  ;;  %v1388_v29 = vmul.f32 %v2653_v21, %v1343_v2  ;;  %v1390_v25 = vmul.f32 %v2633_v10, %v1343_v2  ;;  %v858_v9 = vld [vmem:[#allocation7 + $0xd] sm:$0x1] }
 0x1b9   :  { %v1413_v12 = vsub.f32 %v1411_v38, %v1412_v23  ;;  %v1391_v34 = vmul.f32 %v2657_v26, %v1347_v24  ;;  %v1414_v42 = vmul.f32 %v2616_v43, %v1386_v16  ;;  %vm1348_vm13 = vcmp.ge.f32.partialorder %v2290_v30, 1.4 }
 0x1ba   :  { %v1433_v36 = vmul.f32 %v2629_v52, %v1410_v28  ;;  %v1435_v6 = vmul.f32 %v2610_v62, %v1410_v28  ;;  %v1389_v13 = vsub.f32 %v1387_v1, %v1388_v29  ;;  %v1685_v5 = vsel %vm1348_vm13, 1.0, %v2065_v8 }
 0x1bb   :  { %v1436_v31 = vmul.f32 %v2633_v10, %v1413_v12  ;;  %v1392_v37 = vsub.f32 %v1390_v25, %v1391_v34  ;;  %v1438_v35 = vmul.f32 %v2613_v17, %v1413_v12  ;;  %v1351_v7 = vsub.f32 %v1684_v11, %v1685_v5  ;;  %v861_v11 = vld [vmem:[#allocation7 + $0x19] sm:$0x1] }
 0x1bc   :  { %v1434_v41 = vsub.f32 %v1432_v32, %v1433_v36  ;;  %v1415_v3 = vmul.f32 %v2653_v21, %v1389_v13  ;;  %v1417_v59 = vmul.f32 %v2629_v52, %v1389_v13  ;;  %vm1352_vm8 = vcmp.ge.f32.partialorder %v2290_v30, 1.8 }
 0x1bd   :  { %v1962_v39 = vpop.eup %1961  ;;  %v1437_v48 = vsub.f32 %v1435_v6, %v1436_v31  ;;  %v1418_v62 = vmul.f32 %v2657_v26, %v1392_v37  ;;  %v2675_v40 = vsel %vm1352_vm8, 1.0, %v2065_v8  ;;  %v1697_v18 = vadd.f32 -1.4, %v2290_v30 }
 0x1be   :  { %v1312_v50 = vmul.f32 %v1962_v39, %v2290_v30  ;;  %v1416_v17 = vsub.f32 %v1414_v42, %v1415_v3  ;;  %v1355_v44 = vsub.f32 %v1685_v5, %v2675_v40  ;;  %v1698_v57 = vadd.f32 -1.8, %v2290_v30  ;;  %v1456_v39 = vld [vmem:[#allocation7 + $0xf] sm:$0x1] }
 0x1bf   :  { %v1918_v49 = vpack.c.bf16 %v1437_v48, %v1434_v41  ;;  %v1419_v46 = vsub.f32 %v1417_v59, %v1418_v62  ;;  %v1393_v54 = vmul.f32 %v2653_v21, %v1347_v24  ;;  %v1394_v55 = vmul.f32 %v1697_v18, %v1351_v7 }
 0x1c0   :  { %v1915_v63 = vpack.c.bf16 %v1431_v22, %v1312_v50  ;;  %v1439_v14 = vmul.f32 %v2653_v21, %v1416_v17  ;;  %v1441_v51 = vmul.f32 %v2616_v43, %v1416_v17  ;;  %v1396_v27 = vmul.f32 %v2657_v26, %v1351_v7  ;;  %v862_v22 = vld [vmem:[#allocation7 + $0x1d] sm:$0x1] }
 0x1c1   :  { %v1442_v4 = vmul.f32 %v2657_v26, %v1419_v46  ;;  %v1395_v0 = vsub.f32 %v1393_v54, %v1394_v55  ;;  %v1397_v61 = vmul.f32 %v1698_v57, %v1355_v44  ;;  %v1420_v47 = vmul.f32 %v2633_v10, %v1392_v37  ;;  %v1454_v37 = vld [vmem:[#allocation7 + $0x7] sm:$0x1] }
 0x1c2   :  { %1916 = vmatpush3.bf16.msra.mxu1 %v1915_v63  ;;  %v1440_v20 = vsub.f32 %v1438_v35, %v1439_v14  ;;  %v1444_v56 = vmul.f32 %v2629_v52, %v1419_v46  ;;  %v871_v16 = vrot.slane %v856_v60, 7  ;;  %v874_v32 = vrot.slane %v857_v19, 6  ;;  %v1455_v35 = vld [vmem:[#allocation7 + $0xb] sm:$0x1]  ;;  %v1458_v46 = vld [vmem:[#allocation7 + $0x17] sm:$0x1] }
 0x1c3   :  { %1917 = vmatprep.subr.bf16.mxu1 %v2066_v58  ;;  %v1443_v43 = vsub.f32 %v1441_v51, %v1442_v4  ;;  %v1398_v2 = vsub.f32 %v1396_v27, %v1397_v61  ;;  %v1421_v33 = vmul.f32 %v1697_v18, %v1395_v0  ;;  %v1423_v38 = vmul.f32 %v2653_v21, %v1395_v0  ;;  %v1460_v4 = vld [vmem:[#allocation7 + $0x1f] sm:$0x1] }
 0x1c4   :  { %v873_v23 = vsel %vm872_vm14, %v871_v16, %v855_v45  ;;  %v877_v24 = vrot.slane %v858_v9, 5  ;;  %v880_v28 = vrot.slane %v859_v53, 4  ;;  %v883_v1 = vrot.slane %v860_v15, 3 }
 0x1c5   :  { %v1921_v29 = vpack.c.bf16 %v1443_v43, %v1440_v20  ;;  %v1422_v25 = vsub.f32 %v1420_v47, %v1421_v33  ;;  %v1424_v12 = vmul.f32 %v1698_v57, %v1398_v2  ;;  %v876_v52 = vsel %vm875_vm15, %v874_v32, %v873_v23 }
 0x1c6   :  { %1919 = vmatpush3.bf16.msra.mxu1 %v1918_v49  ;;  %v879_v34 = vsel %vm878_vm0, %v877_v24, %v876_v52  ;;  %v886_v42 = vrot.slane %v861_v11, 2  ;;  %v889_v36 = vrot.slane %v862_v22, 1  ;;  %vm1356_vm9 = vcmp.ge.f32.partialorder %v2290_v30, 2.2  ;;  %v1453_v49 = vld [vmem:[#allocation7 + $0x3] sm:$0x1] }
 0x1c7   :  { %1920 = vmatprep.subr.bf16.mxu1 %v2066_v58  ;;  %v1425_v6 = vsub.f32 %v1423_v38, %v1424_v12  ;;  %v1445_v13 = vmul.f32 %v1697_v18, %v1422_v25  ;;  %v1447_v5 = vmul.f32 %v2633_v10, %v1422_v25  ;;  %v882_v31 = vsel %vm881_vm1, %v880_v28, %v879_v34  ;;  %v1457_v10 = vld [vmem:[#allocation7 + $0x13] sm:$0x1] }
 0x1c8   :  { %v885_v7 = vsel %vm884_vm2, %v883_v1, %v882_v31  ;;  %v1687_v41 = vsel %vm1356_vm9, 1.0, %v2065_v8  ;;  %v1699_v3 = vadd.f32 -2.2, %v2290_v30  ;;  %v1399_v59 = vmul.f32 %v1697_v18, %v1355_v44  ;;  %v1459_v18 = vld [vmem:[#allocation7 + $0x1b] sm:$0x1] }
 0x1c9   :  { %v1446_v48 = vsub.f32 %v1444_v56, %v1445_v13  ;;  %v1448_v62 = vmul.f32 %v1698_v57, %v1425_v6  ;;  %v888_v50 = vsel %vm887_vm3, %v886_v42, %v885_v7  ;;  %v1359_v17 = vsub.f32 %v2675_v40, %v1687_v41 }
 0x1ca   :  { %1922 = vmatpush3.bf16.msra.mxu1 %v1921_v29  ;;  %v891_v54 = vsel %vm890_vm4, %v889_v36, %v888_v50  ;;  %v1469_v55 = vrot.slane %v1454_v37, 7  ;;  %v1471_v44 = vrot.slane %v1455_v35, 6  ;;  %v1473_v57 = vrot.slane %v1456_v39, 5 }
 0x1cb   :  { %1923 = vmatprep.subr.bf16.mxu1 %v2066_v58  ;;  %v1449_v60 = vsub.f32 %v1447_v5, %v1448_v62  ;;  %1797 = vmatmul.mubr.msk.f32.vlgmr.msra.gmra.mrb[4].mxu0 %vm461_vm12, %v891_v54  ;;  %v1400_v30 = vmul.f32 %v1699_v3, %v1359_v17  ;;  %v1475_v63 = vrot.slane %v1457_v10, 4  ;;  %v1477_v40 = vrot.slane %v1458_v46, 3 }
 0x1cc   :  { %v1470_v19 = vsel %vm872_vm14, %v1469_v55, %v1453_v49  ;;  %v1426_v27 = vmul.f32 %v2657_v26, %v1398_v2  ;;  %v1479_v0 = vrot.slane %v1459_v18, 2  ;;  %v1450_v15 = vmul.f32 %v2653_v21, %v1425_v6 }
 0x1cd   :  { %v1924_v14 = vpack.c.bf16 %v1449_v60, %v1446_v48  ;;  %v1401_v51 = vsub.f32 %v1399_v59, %v1400_v30  ;;  %v1472_v45 = vsel %vm875_vm15, %v1471_v44, %v1470_v19  ;;  %v1481_v20 = vrot.slane %v1460_v4, 1 }
 0x1ce   :  { %v1474_v58 = vsel %vm878_vm0, %v1473_v57, %v1472_v45 }
 0x1cf   :  { %1925 = vmatpush3.bf16.msra.mxu1 %v1924_v14  ;;  %v1427_v61 = vmul.f32 %v1699_v3, %v1401_v51  ;;  %v1476_v47 = vsel %vm881_vm1, %v1475_v63, %v1474_v58 }
 0x1d0   :  { %1857 = vmatprep.subr.mxu1 %v2065_v8  ;;  %v1478_v9 = vsel %vm884_vm2, %v1477_v40, %v1476_v47 }
 0x1d1   :  { %v1428_v53 = vsub.f32 %v1426_v27, %v1427_v61  ;;  %v1480_v26 = vsel %vm887_vm3, %v1479_v0, %v1478_v9 }
 0x1d2   :  { %v1482_v32 = vsel %vm890_vm4, %v1481_v20, %v1480_v26 }
 0x1d3   :  { %v1451_v56 = vmul.f32 %v1699_v3, %v1428_v53 }
 0x1d5   :  { %v1452_v16 = vsub.f32 %v1450_v15, %v1451_v56 }
 0x1d7   :  { %1858 = vmatpush3.msra.mxu1 %v1452_v16 }
 0x1d8   :  { %1860 = vmatmul.mubr.msk.f32.vlgmr.msra.gmra.mrb[0].mxu1 %vm461_vm12, %v1482_v32 }
 0x29e   :  { %v960_v43 = vpop.f32.mrb[4].mxu0 }
 0x29f   :  { %v1798_v2 = vpop.f32.mrb[5].mxu0 }
 0x2ab   :  { %v1551_v8 = vpop.f32.mrb[0].mxu1 }
 0x2ac   :  { %v1926_v33 = vadd.f32 %v1551_v8, %v960_v43  ;;  %v1861_v38 = vpop.f32.mrb[1].mxu1 }
 0x2ae   :  { %1556 = vst [vmem:[#allocation8] sm:$0xff] %v1926_v33 }
 0x2af   :  { %2040 = shalt.err (!%p2037_p0)
}
 0x2b0   :  { %s2041_s27 = scalar_lea.hbm %s2731_s3, 128 }
 0x2b1   :  { %p2042_p1 = scmp.ne.s32.totalorder %s2731_s3, %s2041_s27  ;;  %p2045_p2 = scmp.lt.u32.totalorder %s2041_s27, %s2731_s3 }
 0x2b3   :  { %p2047_p3 = pnand %p2045_p2, %p2042_p1 }
 0x2b5   :  { %2050 = shalt.err (!%p2047_p3)
}
 0x2b6   :  { %1566 = dma.vmem_to_hbm [thread:$0]  %s1564_s23, 128, %s2731_s3, [#allocation4]  }
 0x2b7   :  { %2055 = dma.done.wait [#allocation4], 128  }
 0x2b8   :  { %2056 = vsyncadd [#allocation4], 4294967168 }
 0x2b9   :  { %1570 = vsyncpa [#allocation3], 1 }
 0x2ba   :  { %1571 = vsyncpa [#allocation6], 1 }
 0x2bb   :  { %1572 = vsyncpa [#allocation4], 1 }

</bundles_post_ra>
